<compile_context>
chip_gen: v5e
topology: v5e:2x2
jax: 0.10.0
libtpu: 0.0.40
codegen_flags: <defaults>
</compile_context>

<pallas_src>
from functools import partial

import jax
import jax.numpy as jnp
from jax import lax
from jax.experimental import pallas as pl
from jax.experimental.pallas import tpu as pltpu

SUBLANE = 8  # f32 sublane granularity


# ----------------------------- Pallas kernel -------------------------------

def lstm_forward_kernel(x_ref,      # (T*Bp, Ip)  time-major, padded inputs
                        wih0_ref,   # (Ip, 4H)    layer-0 input weights
                        b0_ref,     # (1, 4H)     layer-0 bias (b_ih + b_hh)
                        whh0_ref,   # (H, 4H)     layer-0 recurrent weights
                        wih1_ref,   # (H, 4H)     layer-1 input weights
                        whh1_ref,   # (H, 4H)     layer-1 recurrent weights
                        b1_ref,     # (1, 4H)     layer-1 bias (b_ih + b_hh)
                        fcw_ref,    # (H, Fp)     fc weights (cols zero-padded to 128)
                        fcb_ref,    # (1, Fp)     fc bias (zero-padded)
                        out_ref):   # (Bp, Fp)    fc output (lane-dense)
    f32 = jnp.float32
    TB, _ = x_ref.shape
    H, H4 = whh0_ref.shape          # 32, 128  (4*H == 128: one lane group)
    Bp, Fp = out_ref.shape
    T = TB // Bp

    # Hoisted weight / bias loads (one vld each, reused by every unrolled step).
    whh0 = whh0_ref[...]
    wih1 = wih1_ref[...]
    whh1 = whh1_ref[...]
    b1v = jnp.broadcast_to(b1_ref[...], (Bp, H4))   # hoisted broadcast (not CSE'd in-loop)

    # One-pass gate activation for the packed [i, f, g, o] lane layout:
    #   sigmoid lanes: 0.5 * tanh(0.5 * x) + 0.5   (== sigmoid(x))
    #   g lanes:       1.0 * tanh(1.0 * x) + 0.0
    # -> a single EUP (tanh) push per cell covers all four gates.
    lane = lax.broadcasted_iota(jnp.int32, (Bp, H4), 1)
    is_g = (lane >= 2 * H) & (lane < 3 * H)
    g_scale = jnp.where(is_g, 1.0, 0.5).astype(f32)
    g_off = jnp.where(is_g, 0.0, 0.5).astype(f32)

    def activate(gates):                        # gates: (Bp, 4H)
        a = jnp.tanh(gates * g_scale) * g_scale + g_off
        return (a[:, 0 * H:1 * H], a[:, 1 * H:2 * H],
                a[:, 2 * H:3 * H], a[:, 3 * H:4 * H])

    # ---- prologue: time-parallel layer-0 input projection (one MXU pass) ----
    g0_all = (jnp.dot(x_ref[...], wih0_ref[...], preferred_element_type=f32)
              + jnp.broadcast_to(b0_ref[...], (TB, H4)))          # (T*Bp, 4H)

    # ---- recurrence: fully unrolled (T=8); static, sublane-aligned slices ----
    z = jnp.zeros((Bp, H), f32)
    h0, c0, h1, c1 = z, z, z, z
    for t in range(T):
        # Layer 0: recurrent matmul only (input projection precomputed above).
        gates0 = (g0_all[t * Bp:(t + 1) * Bp, :]
                  + jnp.dot(h0, whh0, preferred_element_type=f32))
        i0, f0, gg0, o0 = activate(gates0)
        c0 = f0 * c0 + i0 * gg0
        h0 = o0 * jnp.tanh(c0)

        # Layer 1: two summed K=H dots (no per-step concatenate).
        gates1 = (jnp.dot(h0, wih1, preferred_element_type=f32)
                  + jnp.dot(h1, whh1, preferred_element_type=f32)
                  + b1v)
        i1, f1, gg1, o1 = activate(gates1)
        c1 = f1 * c1 + i1 * gg1
        h1 = o1 * jnp.tanh(c1)

    # ---- epilogue: fc head (dropout is identity in eval mode), lane-dense store ----
    out_ref[...] = (jnp.dot(h1, fcw_ref[...], preferred_element_type=f32)
                    + jnp.broadcast_to(fcb_ref[...], (Bp, Fp)))


# ------------------------------- wrapper ------------------------------------

@partial(jax.jit, static_argnames=("horizon",))
def stock_price_predictor(x, packed, *, horizon):
    """x: (B, T, I) float32 (batch_first, like PyTorch). Returns (B, horizon)."""
    B, T, I = x.shape
    Ip = packed["wih0_p"].shape[0]
    Fp = packed["fcw_p"].shape[1]
    Bp = ((B + SUBLANE - 1) // SUBLANE) * SUBLANE

    # Single tiny prep fusion: pad batch->Bp / feature->Ip and lay x out time-major
    # so each step's pre-gate block is a static, sublane-aligned slice in the kernel.
    x_p = jnp.pad(x, ((0, Bp - B), (0, 0), (0, Ip - I)))
    x2d = jnp.transpose(x_p, (1, 0, 2)).reshape(T * Bp, Ip)

    out_full = pl.pallas_call(
        lstm_forward_kernel,
        out_shape=jax.ShapeDtypeStruct((Bp, Fp), jnp.float32),
        in_specs=[pl.BlockSpec(memory_space=pltpu.MemorySpace.VMEM)] * 9,
        out_specs=pl.BlockSpec(memory_space=pltpu.MemorySpace.VMEM),
    )(x2d, packed["wih0_p"], packed["b0_p"], packed["whh0_p"],
      packed["wih1_p"], packed["whh1_p"], packed["b1_p"],
      packed["fcw_p"], packed["fcb_p"])

    return out_full[:B, :horizon]


# --------------------------- parameter construction -------------------------

def init_params(key, input_size, hidden, horizon):
    """Deterministic init, PyTorch-style uniform(-1/sqrt(H), 1/sqrt(H)); raw layout."""
    ks = jax.random.split(key, 12)
    bound = 1.0 / jnp.sqrt(hidden)
    u = lambda k, shape: jax.random.uniform(k, shape, jnp.float32, -bound, bound)

    w_ih0 = u(ks[0], (4 * hidden, input_size))
    w_hh0 = u(ks[1], (4 * hidden, hidden))
    b_ih0 = u(ks[2], (4 * hidden,))
    b_hh0 = u(ks[3], (4 * hidden,))
    w_ih1 = u(ks[4], (4 * hidden, hidden))
    w_hh1 = u(ks[5], (4 * hidden, hidden))
    b_ih1 = u(ks[6], (4 * hidden,))
    b_hh1 = u(ks[7], (4 * hidden,))
    fb = 1.0 / jnp.sqrt(hidden)
    fc_w = jax.random.uniform(ks[8], (horizon, hidden), jnp.float32, -fb, fb)
    fc_b = jax.random.uniform(ks[9], (horizon,), jnp.float32, -fb, fb)

    return {
        "wih0_t": w_ih0.T, "whh0_t": w_hh0.T, "b0": (b_ih0 + b_hh0)[None, :],
        "wih1_t": w_ih1.T, "whh1_t": w_hh1.T, "b1": (b_ih1 + b_hh1)[None, :],
        "fcw_t": fc_w.T, "fcb": fc_b[None, :],
    }


def pack_params(params):
    """Pack raw (transposed PyTorch-layout) params into kernel-ready form.

    With H=32, 4H=128: the PyTorch [i,f,g,o] gate blocks map exactly onto one
    128-lane group after transpose — no per-gate padding or reordering needed.
    """
    I = params["wih0_t"].shape[0]
    H = params["whh0_t"].shape[0]
    F = params["fcw_t"].shape[1]
    assert 4 * H == 128, "gate packing assumes 4*H == 128 (one lane group)"
    Ip = ((I + SUBLANE - 1) // SUBLANE) * SUBLANE
    Fp = 128  # lane-dense fc output (sliced to F in the wrapper)

    return {
        "wih0_p": jnp.pad(params["wih0_t"], ((0, Ip - I), (0, 0))),   # (Ip, 4H)
        "b0_p": params["b0"],                                          # (1, 4H)
        "whh0_p": params["whh0_t"],                                    # (H, 4H)
        "wih1_p": params["wih1_t"],                                    # (H, 4H)
        "whh1_p": params["whh1_t"],                                    # (H, 4H)
        "b1_p": params["b1"],                                          # (1, 4H)
        "fcw_p": jnp.pad(params["fcw_t"], ((0, 0), (0, Fp - F))),      # (H, Fp)
        "fcb_p": jnp.pad(params["fcb"], ((0, 0), (0, Fp - F))),        # (1, Fp)
    }


# ------------------------------ pure-JAX reference ---------------------------

def reference_forward(x, params):
    B, T, I = x.shape
    H = params["whh0_t"].shape[0]

    def cell(inp, h, c, wih_t, whh_t, b):
        g = inp @ wih_t + h @ whh_t + b
        i_g = jax.nn.sigmoid(g[:, 0 * H:1 * H])
        f_g = jax.nn.sigmoid(g[:, 1 * H:2 * H])
        g_g = jnp.tanh(g[:, 2 * H:3 * H])
        o_g = jax.nn.sigmoid(g[:, 3 * H:4 * H])
        c_new = f_g * c + i_g * g_g
        return o_g * jnp.tanh(c_new), c_new

    h0 = c0 = h1 = c1 = jnp.zeros((B, H), jnp.float32)
    for t in range(T):
        h0, c0 = cell(x[:, t, :], h0, c0,
                      params["wih0_t"], params["whh0_t"], params["b0"])
        h1, c1 = cell(h0, h1, c1,
                      params["wih1_t"], params["whh1_t"], params["b1"])
    return h1 @ params["fcw_t"] + params["fcb"]


# ----------------------------------- main -----------------------------------

if __name__ == "__main__":
    B, T, I = 2, 8, 3          # batch, sequence length, input_size (module default I=3)
    H, F = 32, 30              # hidden_layer_size, forecast horizon

    key = jax.random.PRNGKey(0)
    k_x, k_p = jax.random.split(key)
    x = jax.random.normal(k_x, (B, T, I), dtype=jnp.float32)
    params = init_params(k_p, I, H, F)
    packed = pack_params(params)

    out = stock_price_predictor(x, packed, horizon=F)
    out = jax.block_until_ready(out)

    ref = reference_forward(x, params)
    assert out.shape == (B, F), out.shape
    assert jnp.allclose(out, ref, atol=1e-4, rtol=1e-4), (
        float(jnp.max(jnp.abs(out - ref))))

    print("KERNEL_OK")
</pallas_src>

<mosaic_0001>
module attributes {stable_mosaic.version = 11 : i64} {
  func.func @lstm_forward_kernel(%arg0: memref<64x8xf32, #tpu.memory_space<vmem>>, %arg1: memref<8x128xf32, #tpu.memory_space<vmem>>, %arg2: memref<1x128xf32, #tpu.memory_space<vmem>>, %arg3: memref<32x128xf32, #tpu.memory_space<vmem>>, %arg4: memref<32x128xf32, #tpu.memory_space<vmem>>, %arg5: memref<32x128xf32, #tpu.memory_space<vmem>>, %arg6: memref<1x128xf32, #tpu.memory_space<vmem>>, %arg7: memref<32x128xf32, #tpu.memory_space<vmem>>, %arg8: memref<1x128xf32, #tpu.memory_space<vmem>>, %arg9: memref<8x128xf32, #tpu.memory_space<vmem>>) attributes {dimension_semantics = [], scalar_prefetch = 0 : i64, scratch_operands = 0 : i64, tpu.core_type = #tpu.core_type<tc>} {
    %c0 = arith.constant 0 : index
    %c0_0 = arith.constant 0 : index
    %0 = vector.load %arg3[%c0, %c0_0] : memref<32x128xf32, #tpu.memory_space<vmem>>, vector<32x128xf32>
    %c0_1 = arith.constant 0 : index
    %c0_2 = arith.constant 0 : index
    %1 = vector.load %arg4[%c0_1, %c0_2] : memref<32x128xf32, #tpu.memory_space<vmem>>, vector<32x128xf32>
    %c0_3 = arith.constant 0 : index
    %c0_4 = arith.constant 0 : index
    %2 = vector.load %arg5[%c0_3, %c0_4] : memref<32x128xf32, #tpu.memory_space<vmem>>, vector<32x128xf32>
    %c0_5 = arith.constant 0 : index
    %c0_6 = arith.constant 0 : index
    %3 = vector.load %arg6[%c0_5, %c0_6] : memref<1x128xf32, #tpu.memory_space<vmem>>, vector<1x128xf32>
    %4 = vector.shape_cast %3 : vector<1x128xf32> to vector<1x128xf32>
    %5 = vector.broadcast %4 : vector<1x128xf32> to vector<8x128xf32>
    %6 = tpu.iota {dimensions = array<i32: 1>} : vector<8x128xi32>
    %c64_i32 = arith.constant 64 : i32
    %7 = vector.broadcast %c64_i32 : i32 to vector<8x128xi32>
    %8 = arith.cmpi sge, %6, %7 : vector<8x128xi32>
    %c96_i32 = arith.constant 96 : i32
    %9 = vector.broadcast %c96_i32 : i32 to vector<8x128xi32>
    %10 = arith.cmpi slt, %6, %9 : vector<8x128xi32>
    %11 = arith.andi %8, %10 : vector<8x128xi1>
    %cst = arith.constant 1.000000e+00 : f32
    %cst_7 = arith.constant 5.000000e-01 : f32
    %12 = vector.broadcast %cst : f32 to vector<8x128xf32>
    %13 = vector.broadcast %cst_7 : f32 to vector<8x128xf32>
    %14 = arith.select %11, %12, %13 : vector<8x128xi1>, vector<8x128xf32>
    %cst_8 = arith.constant 0.000000e+00 : f32
    %cst_9 = arith.constant 5.000000e-01 : f32
    %15 = vector.broadcast %cst_8 : f32 to vector<8x128xf32>
    %16 = vector.broadcast %cst_9 : f32 to vector<8x128xf32>
    %17 = arith.select %11, %15, %16 : vector<8x128xi1>, vector<8x128xf32>
    %c0_10 = arith.constant 0 : index
    %c0_11 = arith.constant 0 : index
    %18 = vector.load %arg0[%c0_10, %c0_11] : memref<64x8xf32, #tpu.memory_space<vmem>>, vector<64x8xf32>
    %c0_12 = arith.constant 0 : index
    %c0_13 = arith.constant 0 : index
    %19 = vector.load %arg1[%c0_12, %c0_13] : memref<8x128xf32, #tpu.memory_space<vmem>>, vector<8x128xf32>
    %cst_14 = arith.constant dense<0.000000e+00> : vector<64x128xf32>
    %20 = tpu.matmul %18, %19, %cst_14 {dimension_numbers = #tpu.dot_dimension_numbers<[1], [0], [0], [1], [0, 0, 1, 1], [], []>} : vector<64x8xf32>, vector<8x128xf32>, vector<64x128xf32> -> vector<64x128xf32>
    %c0_15 = arith.constant 0 : index
    %c0_16 = arith.constant 0 : index
    %21 = vector.load %arg2[%c0_15, %c0_16] : memref<1x128xf32, #tpu.memory_space<vmem>>, vector<1x128xf32>
    %22 = vector.shape_cast %21 : vector<1x128xf32> to vector<1x128xf32>
    %23 = vector.broadcast %22 : vector<1x128xf32> to vector<64x128xf32>
    %24 = arith.addf %20, %23 : vector<64x128xf32>
    %cst_17 = arith.constant 0.000000e+00 : f32
    %25 = vector.broadcast %cst_17 : f32 to vector<8x32xf32>
    %26 = vector.extract_strided_slice %24 {offsets = [0, 0], sizes = [8, 128], strides = [1, 1]} : vector<64x128xf32> to vector<8x128xf32>
    %cst_18 = arith.constant dense<0.000000e+00> : vector<8x128xf32>
    %27 = tpu.matmul %25, %0, %cst_18 {dimension_numbers = #tpu.dot_dimension_numbers<[1], [0], [0], [1], [0, 0, 1, 1], [], []>} : vector<8x32xf32>, vector<32x128xf32>, vector<8x128xf32> -> vector<8x128xf32>
    %28 = arith.addf %26, %27 : vector<8x128xf32>
    %29 = arith.mulf %28, %14 : vector<8x128xf32>
    %30 = math.tanh %29 : vector<8x128xf32>
    %31 = arith.mulf %30, %14 : vector<8x128xf32>
    %32 = arith.addf %31, %17 : vector<8x128xf32>
    %33 = vector.extract_strided_slice %32 {offsets = [0, 0], sizes = [8, 32], strides = [1, 1]} : vector<8x128xf32> to vector<8x32xf32>
    %34 = vector.extract_strided_slice %32 {offsets = [0, 32], sizes = [8, 32], strides = [1, 1]} : vector<8x128xf32> to vector<8x32xf32>
    %35 = vector.extract_strided_slice %32 {offsets = [0, 64], sizes = [8, 32], strides = [1, 1]} : vector<8x128xf32> to vector<8x32xf32>
    %36 = vector.extract_strided_slice %32 {offsets = [0, 96], sizes = [8, 32], strides = [1, 1]} : vector<8x128xf32> to vector<8x32xf32>
    %37 = arith.mulf %34, %25 : vector<8x32xf32>
    %38 = arith.mulf %33, %35 : vector<8x32xf32>
    %39 = arith.addf %37, %38 : vector<8x32xf32>
    %40 = math.tanh %39 : vector<8x32xf32>
    %41 = arith.mulf %36, %40 : vector<8x32xf32>
    %cst_19 = arith.constant dense<0.000000e+00> : vector<8x128xf32>
    %42 = tpu.matmul %41, %1, %cst_19 {dimension_numbers = #tpu.dot_dimension_numbers<[1], [0], [0], [1], [0, 0, 1, 1], [], []>} : vector<8x32xf32>, vector<32x128xf32>, vector<8x128xf32> -> vector<8x128xf32>
    %cst_20 = arith.constant dense<0.000000e+00> : vector<8x128xf32>
    %43 = tpu.matmul %25, %2, %cst_20 {dimension_numbers = #tpu.dot_dimension_numbers<[1], [0], [0], [1], [0, 0, 1, 1], [], []>} : vector<8x32xf32>, vector<32x128xf32>, vector<8x128xf32> -> vector<8x128xf32>
    %44 = arith.addf %42, %43 : vector<8x128xf32>
    %45 = arith.addf %44, %5 : vector<8x128xf32>
    %46 = arith.mulf %45, %14 : vector<8x128xf32>
    %47 = math.tanh %46 : vector<8x128xf32>
    %48 = arith.mulf %47, %14 : vector<8x128xf32>
    %49 = arith.addf %48, %17 : vector<8x128xf32>
    %50 = vector.extract_strided_slice %49 {offsets = [0, 0], sizes = [8, 32], strides = [1, 1]} : vector<8x128xf32> to vector<8x32xf32>
    %51 = vector.extract_strided_slice %49 {offsets = [0, 32], sizes = [8, 32], strides = [1, 1]} : vector<8x128xf32> to vector<8x32xf32>
    %52 = vector.extract_strided_slice %49 {offsets = [0, 64], sizes = [8, 32], strides = [1, 1]} : vector<8x128xf32> to vector<8x32xf32>
    %53 = vector.extract_strided_slice %49 {offsets = [0, 96], sizes = [8, 32], strides = [1, 1]} : vector<8x128xf32> to vector<8x32xf32>
    %54 = arith.mulf %51, %25 : vector<8x32xf32>
    %55 = arith.mulf %50, %52 : vector<8x32xf32>
    %56 = arith.addf %54, %55 : vector<8x32xf32>
    %57 = math.tanh %56 : vector<8x32xf32>
    %58 = arith.mulf %53, %57 : vector<8x32xf32>
    %59 = vector.extract_strided_slice %24 {offsets = [8, 0], sizes = [8, 128], strides = [1, 1]} : vector<64x128xf32> to vector<8x128xf32>
    %cst_21 = arith.constant dense<0.000000e+00> : vector<8x128xf32>
    %60 = tpu.matmul %41, %0, %cst_21 {dimension_numbers = #tpu.dot_dimension_numbers<[1], [0], [0], [1], [0, 0, 1, 1], [], []>} : vector<8x32xf32>, vector<32x128xf32>, vector<8x128xf32> -> vector<8x128xf32>
    %61 = arith.addf %59, %60 : vector<8x128xf32>
    %62 = arith.mulf %61, %14 : vector<8x128xf32>
    %63 = math.tanh %62 : vector<8x128xf32>
    %64 = arith.mulf %63, %14 : vector<8x128xf32>
    %65 = arith.addf %64, %17 : vector<8x128xf32>
    %66 = vector.extract_strided_slice %65 {offsets = [0, 0], sizes = [8, 32], strides = [1, 1]} : vector<8x128xf32> to vector<8x32xf32>
    %67 = vector.extract_strided_slice %65 {offsets = [0, 32], sizes = [8, 32], strides = [1, 1]} : vector<8x128xf32> to vector<8x32xf32>
    %68 = vector.extract_strided_slice %65 {offsets = [0, 64], sizes = [8, 32], strides = [1, 1]} : vector<8x128xf32> to vector<8x32xf32>
    %69 = vector.extract_strided_slice %65 {offsets = [0, 96], sizes = [8, 32], strides = [1, 1]} : vector<8x128xf32> to vector<8x32xf32>
    %70 = arith.mulf %67, %39 : vector<8x32xf32>
    %71 = arith.mulf %66, %68 : vector<8x32xf32>
    %72 = arith.addf %70, %71 : vector<8x32xf32>
    %73 = math.tanh %72 : vector<8x32xf32>
    %74 = arith.mulf %69, %73 : vector<8x32xf32>
    %cst_22 = arith.constant dense<0.000000e+00> : vector<8x128xf32>
    %75 = tpu.matmul %74, %1, %cst_22 {dimension_numbers = #tpu.dot_dimension_numbers<[1], [0], [0], [1], [0, 0, 1, 1], [], []>} : vector<8x32xf32>, vector<32x128xf32>, vector<8x128xf32> -> vector<8x128xf32>
    %cst_23 = arith.constant dense<0.000000e+00> : vector<8x128xf32>
    %76 = tpu.matmul %58, %2, %cst_23 {dimension_numbers = #tpu.dot_dimension_numbers<[1], [0], [0], [1], [0, 0, 1, 1], [], []>} : vector<8x32xf32>, vector<32x128xf32>, vector<8x128xf32> -> vector<8x128xf32>
    %77 = arith.addf %75, %76 : vector<8x128xf32>
    %78 = arith.addf %77, %5 : vector<8x128xf32>
    %79 = arith.mulf %78, %14 : vector<8x128xf32>
    %80 = math.tanh %79 : vector<8x128xf32>
    %81 = arith.mulf %80, %14 : vector<8x128xf32>
    %82 = arith.addf %81, %17 : vector<8x128xf32>
    %83 = vector.extract_strided_slice %82 {offsets = [0, 0], sizes = [8, 32], strides = [1, 1]} : vector<8x128xf32> to vector<8x32xf32>
    %84 = vector.extract_strided_slice %82 {offsets = [0, 32], sizes = [8, 32], strides = [1, 1]} : vector<8x128xf32> to vector<8x32xf32>
    %85 = vector.extract_strided_slice %82 {offsets = [0, 64], sizes = [8, 32], strides = [1, 1]} : vector<8x128xf32> to vector<8x32xf32>
    %86 = vector.extract_strided_slice %82 {offsets = [0, 96], sizes = [8, 32], strides = [1, 1]} : vector<8x128xf32> to vector<8x32xf32>
    %87 = arith.mulf %84, %56 : vector<8x32xf32>
    %88 = arith.mulf %83, %85 : vector<8x32xf32>
    %89 = arith.addf %87, %88 : vector<8x32xf32>
    %90 = math.tanh %89 : vector<8x32xf32>
    %91 = arith.mulf %86, %90 : vector<8x32xf32>
    %92 = vector.extract_strided_slice %24 {offsets = [16, 0], sizes = [8, 128], strides = [1, 1]} : vector<64x128xf32> to vector<8x128xf32>
    %cst_24 = arith.constant dense<0.000000e+00> : vector<8x128xf32>
    %93 = tpu.matmul %74, %0, %cst_24 {dimension_numbers = #tpu.dot_dimension_numbers<[1], [0], [0], [1], [0, 0, 1, 1], [], []>} : vector<8x32xf32>, vector<32x128xf32>, vector<8x128xf32> -> vector<8x128xf32>
    %94 = arith.addf %92, %93 : vector<8x128xf32>
    %95 = arith.mulf %94, %14 : vector<8x128xf32>
    %96 = math.tanh %95 : vector<8x128xf32>
    %97 = arith.mulf %96, %14 : vector<8x128xf32>
    %98 = arith.addf %97, %17 : vector<8x128xf32>
    %99 = vector.extract_strided_slice %98 {offsets = [0, 0], sizes = [8, 32], strides = [1, 1]} : vector<8x128xf32> to vector<8x32xf32>
    %100 = vector.extract_strided_slice %98 {offsets = [0, 32], sizes = [8, 32], strides = [1, 1]} : vector<8x128xf32> to vector<8x32xf32>
    %101 = vector.extract_strided_slice %98 {offsets = [0, 64], sizes = [8, 32], strides = [1, 1]} : vector<8x128xf32> to vector<8x32xf32>
    %102 = vector.extract_strided_slice %98 {offsets = [0, 96], sizes = [8, 32], strides = [1, 1]} : vector<8x128xf32> to vector<8x32xf32>
    %103 = arith.mulf %100, %72 : vector<8x32xf32>
    %104 = arith.mulf %99, %101 : vector<8x32xf32>
    %105 = arith.addf %103, %104 : vector<8x32xf32>
    %106 = math.tanh %105 : vector<8x32xf32>
    %107 = arith.mulf %102, %106 : vector<8x32xf32>
    %cst_25 = arith.constant dense<0.000000e+00> : vector<8x128xf32>
    %108 = tpu.matmul %107, %1, %cst_25 {dimension_numbers = #tpu.dot_dimension_numbers<[1], [0], [0], [1], [0, 0, 1, 1], [], []>} : vector<8x32xf32>, vector<32x128xf32>, vector<8x128xf32> -> vector<8x128xf32>
    %cst_26 = arith.constant dense<0.000000e+00> : vector<8x128xf32>
    %109 = tpu.matmul %91, %2, %cst_26 {dimension_numbers = #tpu.dot_dimension_numbers<[1], [0], [0], [1], [0, 0, 1, 1], [], []>} : vector<8x32xf32>, vector<32x128xf32>, vector<8x128xf32> -> vector<8x128xf32>
    %110 = arith.addf %108, %109 : vector<8x128xf32>
    %111 = arith.addf %110, %5 : vector<8x128xf32>
    %112 = arith.mulf %111, %14 : vector<8x128xf32>
    %113 = math.tanh %112 : vector<8x128xf32>
    %114 = arith.mulf %113, %14 : vector<8x128xf32>
    %115 = arith.addf %114, %17 : vector<8x128xf32>
    %116 = vector.extract_strided_slice %115 {offsets = [0, 0], sizes = [8, 32], strides = [1, 1]} : vector<8x128xf32> to vector<8x32xf32>
    %117 = vector.extract_strided_slice %115 {offsets = [0, 32], sizes = [8, 32], strides = [1, 1]} : vector<8x128xf32> to vector<8x32xf32>
    %118 = vector.extract_strided_slice %115 {offsets = [0, 64], sizes = [8, 32], strides = [1, 1]} : vector<8x128xf32> to vector<8x32xf32>
    %119 = vector.extract_strided_slice %115 {offsets = [0, 96], sizes = [8, 32], strides = [1, 1]} : vector<8x128xf32> to vector<8x32xf32>
    %120 = arith.mulf %117, %89 : vector<8x32xf32>
    %121 = arith.mulf %116, %118 : vector<8x32xf32>
    %122 = arith.addf %120, %121 : vector<8x32xf32>
    %123 = math.tanh %122 : vector<8x32xf32>
    %124 = arith.mulf %119, %123 : vector<8x32xf32>
    %125 = vector.extract_strided_slice %24 {offsets = [24, 0], sizes = [8, 128], strides = [1, 1]} : vector<64x128xf32> to vector<8x128xf32>
    %cst_27 = arith.constant dense<0.000000e+00> : vector<8x128xf32>
    %126 = tpu.matmul %107, %0, %cst_27 {dimension_numbers = #tpu.dot_dimension_numbers<[1], [0], [0], [1], [0, 0, 1, 1], [], []>} : vector<8x32xf32>, vector<32x128xf32>, vector<8x128xf32> -> vector<8x128xf32>
    %127 = arith.addf %125, %126 : vector<8x128xf32>
    %128 = arith.mulf %127, %14 : vector<8x128xf32>
    %129 = math.tanh %128 : vector<8x128xf32>
    %130 = arith.mulf %129, %14 : vector<8x128xf32>
    %131 = arith.addf %130, %17 : vector<8x128xf32>
    %132 = vector.extract_strided_slice %131 {offsets = [0, 0], sizes = [8, 32], strides = [1, 1]} : vector<8x128xf32> to vector<8x32xf32>
    %133 = vector.extract_strided_slice %131 {offsets = [0, 32], sizes = [8, 32], strides = [1, 1]} : vector<8x128xf32> to vector<8x32xf32>
    %134 = vector.extract_strided_slice %131 {offsets = [0, 64], sizes = [8, 32], strides = [1, 1]} : vector<8x128xf32> to vector<8x32xf32>
    %135 = vector.extract_strided_slice %131 {offsets = [0, 96], sizes = [8, 32], strides = [1, 1]} : vector<8x128xf32> to vector<8x32xf32>
    %136 = arith.mulf %133, %105 : vector<8x32xf32>
    %137 = arith.mulf %132, %134 : vector<8x32xf32>
    %138 = arith.addf %136, %137 : vector<8x32xf32>
    %139 = math.tanh %138 : vector<8x32xf32>
    %140 = arith.mulf %135, %139 : vector<8x32xf32>
    %cst_28 = arith.constant dense<0.000000e+00> : vector<8x128xf32>
    %141 = tpu.matmul %140, %1, %cst_28 {dimension_numbers = #tpu.dot_dimension_numbers<[1], [0], [0], [1], [0, 0, 1, 1], [], []>} : vector<8x32xf32>, vector<32x128xf32>, vector<8x128xf32> -> vector<8x128xf32>
    %cst_29 = arith.constant dense<0.000000e+00> : vector<8x128xf32>
    %142 = tpu.matmul %124, %2, %cst_29 {dimension_numbers = #tpu.dot_dimension_numbers<[1], [0], [0], [1], [0, 0, 1, 1], [], []>} : vector<8x32xf32>, vector<32x128xf32>, vector<8x128xf32> -> vector<8x128xf32>
    %143 = arith.addf %141, %142 : vector<8x128xf32>
    %144 = arith.addf %143, %5 : vector<8x128xf32>
    %145 = arith.mulf %144, %14 : vector<8x128xf32>
    %146 = math.tanh %145 : vector<8x128xf32>
    %147 = arith.mulf %146, %14 : vector<8x128xf32>
    %148 = arith.addf %147, %17 : vector<8x128xf32>
    %149 = vector.extract_strided_slice %148 {offsets = [0, 0], sizes = [8, 32], strides = [1, 1]} : vector<8x128xf32> to vector<8x32xf32>
    %150 = vector.extract_strided_slice %148 {offsets = [0, 32], sizes = [8, 32], strides = [1, 1]} : vector<8x128xf32> to vector<8x32xf32>
    %151 = vector.extract_strided_slice %148 {offsets = [0, 64], sizes = [8, 32], strides = [1, 1]} : vector<8x128xf32> to vector<8x32xf32>
    %152 = vector.extract_strided_slice %148 {offsets = [0, 96], sizes = [8, 32], strides = [1, 1]} : vector<8x128xf32> to vector<8x32xf32>
    %153 = arith.mulf %150, %122 : vector<8x32xf32>
    %154 = arith.mulf %149, %151 : vector<8x32xf32>
    %155 = arith.addf %153, %154 : vector<8x32xf32>
    %156 = math.tanh %155 : vector<8x32xf32>
    %157 = arith.mulf %152, %156 : vector<8x32xf32>
    %158 = vector.extract_strided_slice %24 {offsets = [32, 0], sizes = [8, 128], strides = [1, 1]} : vector<64x128xf32> to vector<8x128xf32>
    %cst_30 = arith.constant dense<0.000000e+00> : vector<8x128xf32>
    %159 = tpu.matmul %140, %0, %cst_30 {dimension_numbers = #tpu.dot_dimension_numbers<[1], [0], [0], [1], [0, 0, 1, 1], [], []>} : vector<8x32xf32>, vector<32x128xf32>, vector<8x128xf32> -> vector<8x128xf32>
    %160 = arith.addf %158, %159 : vector<8x128xf32>
    %161 = arith.mulf %160, %14 : vector<8x128xf32>
    %162 = math.tanh %161 : vector<8x128xf32>
    %163 = arith.mulf %162, %14 : vector<8x128xf32>
    %164 = arith.addf %163, %17 : vector<8x128xf32>
    %165 = vector.extract_strided_slice %164 {offsets = [0, 0], sizes = [8, 32], strides = [1, 1]} : vector<8x128xf32> to vector<8x32xf32>
    %166 = vector.extract_strided_slice %164 {offsets = [0, 32], sizes = [8, 32], strides = [1, 1]} : vector<8x128xf32> to vector<8x32xf32>
    %167 = vector.extract_strided_slice %164 {offsets = [0, 64], sizes = [8, 32], strides = [1, 1]} : vector<8x128xf32> to vector<8x32xf32>
    %168 = vector.extract_strided_slice %164 {offsets = [0, 96], sizes = [8, 32], strides = [1, 1]} : vector<8x128xf32> to vector<8x32xf32>
    %169 = arith.mulf %166, %138 : vector<8x32xf32>
    %170 = arith.mulf %165, %167 : vector<8x32xf32>
    %171 = arith.addf %169, %170 : vector<8x32xf32>
    %172 = math.tanh %171 : vector<8x32xf32>
    %173 = arith.mulf %168, %172 : vector<8x32xf32>
    %cst_31 = arith.constant dense<0.000000e+00> : vector<8x128xf32>
    %174 = tpu.matmul %173, %1, %cst_31 {dimension_numbers = #tpu.dot_dimension_numbers<[1], [0], [0], [1], [0, 0, 1, 1], [], []>} : vector<8x32xf32>, vector<32x128xf32>, vector<8x128xf32> -> vector<8x128xf32>
    %cst_32 = arith.constant dense<0.000000e+00> : vector<8x128xf32>
    %175 = tpu.matmul %157, %2, %cst_32 {dimension_numbers = #tpu.dot_dimension_numbers<[1], [0], [0], [1], [0, 0, 1, 1], [], []>} : vector<8x32xf32>, vector<32x128xf32>, vector<8x128xf32> -> vector<8x128xf32>
    %176 = arith.addf %174, %175 : vector<8x128xf32>
    %177 = arith.addf %176, %5 : vector<8x128xf32>
    %178 = arith.mulf %177, %14 : vector<8x128xf32>
    %179 = math.tanh %178 : vector<8x128xf32>
    %180 = arith.mulf %179, %14 : vector<8x128xf32>
    %181 = arith.addf %180, %17 : vector<8x128xf32>
    %182 = vector.extract_strided_slice %181 {offsets = [0, 0], sizes = [8, 32], strides = [1, 1]} : vector<8x128xf32> to vector<8x32xf32>
    %183 = vector.extract_strided_slice %181 {offsets = [0, 32], sizes = [8, 32], strides = [1, 1]} : vector<8x128xf32> to vector<8x32xf32>
    %184 = vector.extract_strided_slice %181 {offsets = [0, 64], sizes = [8, 32], strides = [1, 1]} : vector<8x128xf32> to vector<8x32xf32>
    %185 = vector.extract_strided_slice %181 {offsets = [0, 96], sizes = [8, 32], strides = [1, 1]} : vector<8x128xf32> to vector<8x32xf32>
    %186 = arith.mulf %183, %155 : vector<8x32xf32>
    %187 = arith.mulf %182, %184 : vector<8x32xf32>
    %188 = arith.addf %186, %187 : vector<8x32xf32>
    %189 = math.tanh %188 : vector<8x32xf32>
    %190 = arith.mulf %185, %189 : vector<8x32xf32>
    %191 = vector.extract_strided_slice %24 {offsets = [40, 0], sizes = [8, 128], strides = [1, 1]} : vector<64x128xf32> to vector<8x128xf32>
    %cst_33 = arith.constant dense<0.000000e+00> : vector<8x128xf32>
    %192 = tpu.matmul %173, %0, %cst_33 {dimension_numbers = #tpu.dot_dimension_numbers<[1], [0], [0], [1], [0, 0, 1, 1], [], []>} : vector<8x32xf32>, vector<32x128xf32>, vector<8x128xf32> -> vector<8x128xf32>
    %193 = arith.addf %191, %192 : vector<8x128xf32>
    %194 = arith.mulf %193, %14 : vector<8x128xf32>
    %195 = math.tanh %194 : vector<8x128xf32>
    %196 = arith.mulf %195, %14 : vector<8x128xf32>
    %197 = arith.addf %196, %17 : vector<8x128xf32>
    %198 = vector.extract_strided_slice %197 {offsets = [0, 0], sizes = [8, 32], strides = [1, 1]} : vector<8x128xf32> to vector<8x32xf32>
    %199 = vector.extract_strided_slice %197 {offsets = [0, 32], sizes = [8, 32], strides = [1, 1]} : vector<8x128xf32> to vector<8x32xf32>
    %200 = vector.extract_strided_slice %197 {offsets = [0, 64], sizes = [8, 32], strides = [1, 1]} : vector<8x128xf32> to vector<8x32xf32>
    %201 = vector.extract_strided_slice %197 {offsets = [0, 96], sizes = [8, 32], strides = [1, 1]} : vector<8x128xf32> to vector<8x32xf32>
    %202 = arith.mulf %199, %171 : vector<8x32xf32>
    %203 = arith.mulf %198, %200 : vector<8x32xf32>
    %204 = arith.addf %202, %203 : vector<8x32xf32>
    %205 = math.tanh %204 : vector<8x32xf32>
    %206 = arith.mulf %201, %205 : vector<8x32xf32>
    %cst_34 = arith.constant dense<0.000000e+00> : vector<8x128xf32>
    %207 = tpu.matmul %206, %1, %cst_34 {dimension_numbers = #tpu.dot_dimension_numbers<[1], [0], [0], [1], [0, 0, 1, 1], [], []>} : vector<8x32xf32>, vector<32x128xf32>, vector<8x128xf32> -> vector<8x128xf32>
    %cst_35 = arith.constant dense<0.000000e+00> : vector<8x128xf32>
    %208 = tpu.matmul %190, %2, %cst_35 {dimension_numbers = #tpu.dot_dimension_numbers<[1], [0], [0], [1], [0, 0, 1, 1], [], []>} : vector<8x32xf32>, vector<32x128xf32>, vector<8x128xf32> -> vector<8x128xf32>
    %209 = arith.addf %207, %208 : vector<8x128xf32>
    %210 = arith.addf %209, %5 : vector<8x128xf32>
    %211 = arith.mulf %210, %14 : vector<8x128xf32>
    %212 = math.tanh %211 : vector<8x128xf32>
    %213 = arith.mulf %212, %14 : vector<8x128xf32>
    %214 = arith.addf %213, %17 : vector<8x128xf32>
    %215 = vector.extract_strided_slice %214 {offsets = [0, 0], sizes = [8, 32], strides = [1, 1]} : vector<8x128xf32> to vector<8x32xf32>
    %216 = vector.extract_strided_slice %214 {offsets = [0, 32], sizes = [8, 32], strides = [1, 1]} : vector<8x128xf32> to vector<8x32xf32>
    %217 = vector.extract_strided_slice %214 {offsets = [0, 64], sizes = [8, 32], strides = [1, 1]} : vector<8x128xf32> to vector<8x32xf32>
    %218 = vector.extract_strided_slice %214 {offsets = [0, 96], sizes = [8, 32], strides = [1, 1]} : vector<8x128xf32> to vector<8x32xf32>
    %219 = arith.mulf %216, %188 : vector<8x32xf32>
    %220 = arith.mulf %215, %217 : vector<8x32xf32>
    %221 = arith.addf %219, %220 : vector<8x32xf32>
    %222 = math.tanh %221 : vector<8x32xf32>
    %223 = arith.mulf %218, %222 : vector<8x32xf32>
    %224 = vector.extract_strided_slice %24 {offsets = [48, 0], sizes = [8, 128], strides = [1, 1]} : vector<64x128xf32> to vector<8x128xf32>
    %cst_36 = arith.constant dense<0.000000e+00> : vector<8x128xf32>
    %225 = tpu.matmul %206, %0, %cst_36 {dimension_numbers = #tpu.dot_dimension_numbers<[1], [0], [0], [1], [0, 0, 1, 1], [], []>} : vector<8x32xf32>, vector<32x128xf32>, vector<8x128xf32> -> vector<8x128xf32>
    %226 = arith.addf %224, %225 : vector<8x128xf32>
    %227 = arith.mulf %226, %14 : vector<8x128xf32>
    %228 = math.tanh %227 : vector<8x128xf32>
    %229 = arith.mulf %228, %14 : vector<8x128xf32>
    %230 = arith.addf %229, %17 : vector<8x128xf32>
    %231 = vector.extract_strided_slice %230 {offsets = [0, 0], sizes = [8, 32], strides = [1, 1]} : vector<8x128xf32> to vector<8x32xf32>
    %232 = vector.extract_strided_slice %230 {offsets = [0, 32], sizes = [8, 32], strides = [1, 1]} : vector<8x128xf32> to vector<8x32xf32>
    %233 = vector.extract_strided_slice %230 {offsets = [0, 64], sizes = [8, 32], strides = [1, 1]} : vector<8x128xf32> to vector<8x32xf32>
    %234 = vector.extract_strided_slice %230 {offsets = [0, 96], sizes = [8, 32], strides = [1, 1]} : vector<8x128xf32> to vector<8x32xf32>
    %235 = arith.mulf %232, %204 : vector<8x32xf32>
    %236 = arith.mulf %231, %233 : vector<8x32xf32>
    %237 = arith.addf %235, %236 : vector<8x32xf32>
    %238 = math.tanh %237 : vector<8x32xf32>
    %239 = arith.mulf %234, %238 : vector<8x32xf32>
    %cst_37 = arith.constant dense<0.000000e+00> : vector<8x128xf32>
    %240 = tpu.matmul %239, %1, %cst_37 {dimension_numbers = #tpu.dot_dimension_numbers<[1], [0], [0], [1], [0, 0, 1, 1], [], []>} : vector<8x32xf32>, vector<32x128xf32>, vector<8x128xf32> -> vector<8x128xf32>
    %cst_38 = arith.constant dense<0.000000e+00> : vector<8x128xf32>
    %241 = tpu.matmul %223, %2, %cst_38 {dimension_numbers = #tpu.dot_dimension_numbers<[1], [0], [0], [1], [0, 0, 1, 1], [], []>} : vector<8x32xf32>, vector<32x128xf32>, vector<8x128xf32> -> vector<8x128xf32>
    %242 = arith.addf %240, %241 : vector<8x128xf32>
    %243 = arith.addf %242, %5 : vector<8x128xf32>
    %244 = arith.mulf %243, %14 : vector<8x128xf32>
    %245 = math.tanh %244 : vector<8x128xf32>
    %246 = arith.mulf %245, %14 : vector<8x128xf32>
    %247 = arith.addf %246, %17 : vector<8x128xf32>
    %248 = vector.extract_strided_slice %247 {offsets = [0, 0], sizes = [8, 32], strides = [1, 1]} : vector<8x128xf32> to vector<8x32xf32>
    %249 = vector.extract_strided_slice %247 {offsets = [0, 32], sizes = [8, 32], strides = [1, 1]} : vector<8x128xf32> to vector<8x32xf32>
    %250 = vector.extract_strided_slice %247 {offsets = [0, 64], sizes = [8, 32], strides = [1, 1]} : vector<8x128xf32> to vector<8x32xf32>
    %251 = vector.extract_strided_slice %247 {offsets = [0, 96], sizes = [8, 32], strides = [1, 1]} : vector<8x128xf32> to vector<8x32xf32>
    %252 = arith.mulf %249, %221 : vector<8x32xf32>
    %253 = arith.mulf %248, %250 : vector<8x32xf32>
    %254 = arith.addf %252, %253 : vector<8x32xf32>
    %255 = math.tanh %254 : vector<8x32xf32>
    %256 = arith.mulf %251, %255 : vector<8x32xf32>
    %257 = vector.extract_strided_slice %24 {offsets = [56, 0], sizes = [8, 128], strides = [1, 1]} : vector<64x128xf32> to vector<8x128xf32>
    %cst_39 = arith.constant dense<0.000000e+00> : vector<8x128xf32>
    %258 = tpu.matmul %239, %0, %cst_39 {dimension_numbers = #tpu.dot_dimension_numbers<[1], [0], [0], [1], [0, 0, 1, 1], [], []>} : vector<8x32xf32>, vector<32x128xf32>, vector<8x128xf32> -> vector<8x128xf32>
    %259 = arith.addf %257, %258 : vector<8x128xf32>
    %260 = arith.mulf %259, %14 : vector<8x128xf32>
    %261 = math.tanh %260 : vector<8x128xf32>
    %262 = arith.mulf %261, %14 : vector<8x128xf32>
    %263 = arith.addf %262, %17 : vector<8x128xf32>
    %264 = vector.extract_strided_slice %263 {offsets = [0, 0], sizes = [8, 32], strides = [1, 1]} : vector<8x128xf32> to vector<8x32xf32>
    %265 = vector.extract_strided_slice %263 {offsets = [0, 32], sizes = [8, 32], strides = [1, 1]} : vector<8x128xf32> to vector<8x32xf32>
    %266 = vector.extract_strided_slice %263 {offsets = [0, 64], sizes = [8, 32], strides = [1, 1]} : vector<8x128xf32> to vector<8x32xf32>
    %267 = vector.extract_strided_slice %263 {offsets = [0, 96], sizes = [8, 32], strides = [1, 1]} : vector<8x128xf32> to vector<8x32xf32>
    %268 = arith.mulf %265, %237 : vector<8x32xf32>
    %269 = arith.mulf %264, %266 : vector<8x32xf32>
    %270 = arith.addf %268, %269 : vector<8x32xf32>
    %271 = math.tanh %270 : vector<8x32xf32>
    %272 = arith.mulf %267, %271 : vector<8x32xf32>
    %cst_40 = arith.constant dense<0.000000e+00> : vector<8x128xf32>
    %273 = tpu.matmul %272, %1, %cst_40 {dimension_numbers = #tpu.dot_dimension_numbers<[1], [0], [0], [1], [0, 0, 1, 1], [], []>} : vector<8x32xf32>, vector<32x128xf32>, vector<8x128xf32> -> vector<8x128xf32>
    %cst_41 = arith.constant dense<0.000000e+00> : vector<8x128xf32>
    %274 = tpu.matmul %256, %2, %cst_41 {dimension_numbers = #tpu.dot_dimension_numbers<[1], [0], [0], [1], [0, 0, 1, 1], [], []>} : vector<8x32xf32>, vector<32x128xf32>, vector<8x128xf32> -> vector<8x128xf32>
    %275 = arith.addf %273, %274 : vector<8x128xf32>
    %276 = arith.addf %275, %5 : vector<8x128xf32>
    %277 = arith.mulf %276, %14 : vector<8x128xf32>
    %278 = math.tanh %277 : vector<8x128xf32>
    %279 = arith.mulf %278, %14 : vector<8x128xf32>
    %280 = arith.addf %279, %17 : vector<8x128xf32>
    %281 = vector.extract_strided_slice %280 {offsets = [0, 0], sizes = [8, 32], strides = [1, 1]} : vector<8x128xf32> to vector<8x32xf32>
    %282 = vector.extract_strided_slice %280 {offsets = [0, 32], sizes = [8, 32], strides = [1, 1]} : vector<8x128xf32> to vector<8x32xf32>
    %283 = vector.extract_strided_slice %280 {offsets = [0, 64], sizes = [8, 32], strides = [1, 1]} : vector<8x128xf32> to vector<8x32xf32>
    %284 = vector.extract_strided_slice %280 {offsets = [0, 96], sizes = [8, 32], strides = [1, 1]} : vector<8x128xf32> to vector<8x32xf32>
    %285 = arith.mulf %282, %254 : vector<8x32xf32>
    %286 = arith.mulf %281, %283 : vector<8x32xf32>
    %287 = arith.addf %285, %286 : vector<8x32xf32>
    %288 = math.tanh %287 : vector<8x32xf32>
    %289 = arith.mulf %284, %288 : vector<8x32xf32>
    %c0_42 = arith.constant 0 : index
    %c0_43 = arith.constant 0 : index
    %290 = vector.load %arg7[%c0_42, %c0_43] : memref<32x128xf32, #tpu.memory_space<vmem>>, vector<32x128xf32>
    %cst_44 = arith.constant dense<0.000000e+00> : vector<8x128xf32>
    %291 = tpu.matmul %289, %290, %cst_44 {dimension_numbers = #tpu.dot_dimension_numbers<[1], [0], [0], [1], [0, 0, 1, 1], [], []>} : vector<8x32xf32>, vector<32x128xf32>, vector<8x128xf32> -> vector<8x128xf32>
    %c0_45 = arith.constant 0 : index
    %c0_46 = arith.constant 0 : index
    %292 = vector.load %arg8[%c0_45, %c0_46] : memref<1x128xf32, #tpu.memory_space<vmem>>, vector<1x128xf32>
    %293 = vector.shape_cast %292 : vector<1x128xf32> to vector<1x128xf32>
    %294 = vector.broadcast %293 : vector<1x128xf32> to vector<8x128xf32>
    %295 = arith.addf %291, %294 : vector<8x128xf32>
    %c0_47 = arith.constant 0 : index
    %c0_48 = arith.constant 0 : index
    %296 = vector.load %arg9[%c0_47, %c0_48] : memref<8x128xf32, #tpu.memory_space<vmem>>, vector<8x128xf32>
    tpu.vector_store %arg9[%c0_47, %c0_48], %295 {strides = array<i32>} : memref<8x128xf32, #tpu.memory_space<vmem>>, vector<8x128xf32>,
    return
  }
}

</mosaic_0001>

<bundles_post_ra>
// kernel: stock_price_predictor.1
= control target key start
LH: loop header
LB: loop body
LE: loop exit
PB: predicated region body
PF: predicated region fallthrough
CT: control target
= control target key end

     0   :  { %vm68_vm0 = vcmask 64512   ;;  %v1185_v6 = vmov 0.0   ;;  %v48_v7 = vlaneseq  ;;  %v1186_v12 = vmov 0.5   ;;  %s1188_s21 = smov 32   ;;  %s1621_s3 = inlined_call_operand.vmem [shape: f32[32,128], index: 3, kind: input, shape index: {}]   ;;  %s1622_s1 = inlined_call_operand.vmem [shape: f32[8,128], index: 1, kind: input, shape index: {}]   ;;  %s1623_s0 = inlined_call_operand.vmem [shape: f32[64,8], index: 0, kind: input, shape index: {}]   ;;  %s1624_s2 = inlined_call_operand.vmem [shape: f32[1,128], index: 2, kind: input, shape index: {}]   ;;  %s1625_s5 = inlined_call_operand.vmem [shape: f32[32,128], index: 5, kind: input, shape index: {}]   ;;  %s1626_s4 = inlined_call_operand.vmem [shape: f32[32,128], index: 4, kind: input, shape index: {}]   ;;  %s1627_s6 = inlined_call_operand.vmem [shape: f32[1,128], index: 6, kind: input, shape index: {}]   ;;  %s1628_s7 = inlined_call_operand.vmem [shape: f32[32,128], index: 7, kind: input, shape index: {}]   ;;  %s1629_s8 = inlined_call_operand.vmem [shape: f32[1,128], index: 8, kind: input, shape index: {}]   ;;  %s1630_s9 = inlined_call_operand.vmem [shape: f32[8,128], index: 9, kind: output, shape index: {}]  }
   0x1   :  { %v1242_v0 = vld [vmem:[%s1621_s3 + $0x18] sm:$0xff]  ;;  %v1247_v1 = vld [vmem:[%s1621_s3 + $0x10] sm:$0xff]  ;;  %v63_v2 = vld [vmem:[%s1622_s1] sm:$0xff]  ;;  %vm134_vm4 = vcmask 261120  }
   0x2   :  { %150 = vmatpush.msra.mxu1 %v1242_v0  ;;  %108 = vmatpush.msra.mxu0 %v63_v2  ;;  %v55_v3 = vld [vmem:[%s1623_s0] sm:$0xff]  ;;  %v1259_v4 = vld [vmem:[%s1621_s3 + $0x8] sm:$0xff]  ;;  %v49_v8 = vand.u32 127, %v48_v7  ;;  %v1300_v27 = vld [vmem:[%s1625_s5 + $0x18] sm:$0xff] }
   0x3   :  { %1083 = vmatmul.msk.f32.vlgmr.msra.gmra.mxu0 %vm68_vm0, %v55_v3  ;;  %v1266_v5 = vld [vmem:[%s1621_s3] sm:$0xff]  ;;  %v1305_v28 = vld [vmem:[%s1626_s4 + $0x18] sm:$0xff]  ;;  %v1310_v29 = vld [vmem:[%s1625_s5 + $0x10] sm:$0xff]  ;;  %192 = vmatpush.msra.mxu2 %v1300_v27 }
   0x4   :  { %151 = vmatpush.msra.mxu1 %v1247_v1  ;;  %v1281_v9 = vld [vmem:[%s1624_s2] ss:$0 sm:$0xff]  ;;  %vm50_vm1 = vcmp.ge.s32.totalorder %v49_v8, 64  ;;  %vm51_vm2 = vcmp.lt.s32.totalorder %v49_v8, 96  ;;  %s1187_s2 = smov 64   ;;  %217 = vmatpush.msra.mxu3 %v1305_v28  ;;  %v1317_v30 = vld [vmem:[%s1626_s4 + $0x10] sm:$0xff] }
   0x5   :  { %vm52_vm3 = vmand %vm50_vm1, %vm51_vm2  ;;  %v1322_v31 = vld [vmem:[%s1625_s5 + $0x8] sm:$0xff]  ;;  %193 = vmatpush.msra.mxu2 %v1310_v29  ;;  %v1338_v34 = vld [vmem:[%s1625_s5] sm:$0xff] }
   0x6   :  { %152 = vmatpush.msra.mxu1 %v1259_v4  ;;  %v1284_v13 = vsel %vm52_vm3, 1.0, %v1186_v12  ;;  %v1287_v18 = vsel %vm52_vm3, 0.0, %v1186_v12  ;;  %v1327_v32 = vld [vmem:[%s1626_s4 + $0x8] sm:$0xff]  ;;  %218 = vmatpush.msra.mxu3 %v1317_v30  ;;  %v1343_v35 = vld [vmem:[%s1626_s4] sm:$0xff] }
   0x7   :  { %v56_v33 = vld [vmem:[%s1623_s0 + $0x8] sm:$0xff]  ;;  %194 = vmatpush.msra.mxu2 %v1322_v31  ;;  %v1376_v42 = vld [vmem:[%s1627_s6] ss:$0 sm:$0xff] }
   0x8   :  { %153 = vmatpush.msra.mxu1 %v1266_v5  ;;  %219 = vmatpush.msra.mxu3 %v1327_v32 }
   0x9   :  { %154 = vmatmul.f32.vlgmr.msra.gmra.mxu1 %v1185_v6  ;;  %195 = vmatpush.msra.mxu2 %v1338_v34 }
   0xa   :  { %259 = vmatpush.msrb.mxu1 %v1242_v0  ;;  %220 = vmatpush.msra.mxu3 %v1343_v35 }
   0xb   :  { %1084 = vmatmul.msk.f32.gmra.mxu0 %vm68_vm0, %v56_v33  ;;  %196 = vmatmul.f32.vlgmr.msra.gmra.mxu2 %v1185_v6 }
   0xc   :  { %260 = vmatpush.msrb.mxu1 %v1247_v1  ;;  %331 = vmatpush.msrb.mxu3 %v1305_v28 }
   0xd   :  { %306 = vmatpush.msrb.mxu2 %v1300_v27 }
   0xe   :  { %261 = vmatpush.msrb.mxu1 %v1259_v4  ;;  %332 = vmatpush.msrb.mxu3 %v1317_v30 }
   0xf   :  { %307 = vmatpush.msrb.mxu2 %v1310_v29 }
  0x10   :  { %262 = vmatpush.msrb.mxu1 %v1266_v5  ;;  %333 = vmatpush.msrb.mxu3 %v1327_v32 }
  0x11   :  { %308 = vmatpush.msrb.mxu2 %v1322_v31 }
  0x12   :  { %373 = vmatpush.msra.mxu1 %v1242_v0  ;;  %334 = vmatpush.msrb.mxu3 %v1343_v35 }
  0x13   :  { %309 = vmatpush.msrb.mxu2 %v1338_v34 }
  0x14   :  { %374 = vmatpush.msra.mxu1 %v1247_v1 }
  0x15   :  { %420 = vmatpush.msra.mxu2 %v1300_v27 }
  0x16   :  { %375 = vmatpush.msra.mxu1 %v1259_v4 }
  0x17   :  { %421 = vmatpush.msra.mxu2 %v1310_v29 }
  0x18   :  { %376 = vmatpush.msra.mxu1 %v1266_v5 }
  0x19   :  { %422 = vmatpush.msra.mxu2 %v1322_v31 }
  0x1b   :  { %423 = vmatpush.msra.mxu2 %v1338_v34 }
  0x80   :  { %v110_v10 = vpop.f32.mrf.mxu0 }
  0x81   :  { %v111_v11 = vadd.f32 %v1281_v9, %v110_v10 }
  0x86   :  { %v155_v14 = vpop.f32.mrf.mxu1 }
  0x87   :  { %v158_v15 = vadd.f32 %v155_v14, %v111_v11  ;;  %v57_v14 = vld [vmem:[%s1623_s0 + $0x10] sm:$0xff] }
  0x88   :  { %v113_v39 = vpop.f32.mrf.mxu0  ;;  %1085 = vmatmul.msk.f32.gmra.mxu0 %vm68_vm0, %v57_v14 }
  0x89   :  { %v159_v16 = vmul.f32 %v158_v15, %v1284_v13  ;;  %v114_v41 = vadd.f32 %v1281_v9, %v113_v39 }
  0x8b   :  { %1121 = vtanh.f32 %v159_v16 }
  0x8e   :  { %v197_v40 = vpop.f32.mrf.mxu2 }
  0x91   :  { %v1122_v17 = vpop.eup %1121 }
  0x92   :  { %v161_v19 = vmul.f32 %v1122_v17, %v1284_v13 }
  0x94   :  { %v162_v20 = vadd.f32 %v161_v19, %v1287_v18 }
  0x96   :  { %165 = vrot.lane.b32.xlu0 %v162_v20, %s1187_s2  ;;  %v163_v23 = vmul.f32 0.0, %v162_v20 }
 0x105   :  { %v116_v17 = vpop.f32.mrf.mxu0 }
 0x106   :  { %v117_v19 = vadd.f32 %v1281_v9, %v116_v17 }
 0x108   :  { %v166_v21 = vpop.permute.xlu0 %165 }
 0x109   :  { %v168_v22 = vmul.f32 %v166_v21, %v162_v20 }
 0x10b   :  { %170 = vrot.lane.b32.xlu0 %v168_v22, %s1188_s21 }
 0x17d   :  { %v171_v24 = vpop.permute.xlu0 %170 }
 0x17e   :  { %v1293_v25 = vadd.f32 %v171_v24, %v163_v23 }
 0x180   :  { %1123 = vtanh.f32 %v1293_v25 }
 0x186   :  { %v1124_v26 = vpop.eup %1123 }
 0x187   :  { %176 = vrot.lane.b32.xlu1 %v1124_v26, %s1187_s2 }
 0x1f9   :  { %v177_v36 = vpop.permute.xlu1 %176 }
 0x1fa   :  { %v179_v37 = vmul.f32 %v177_v36, %v162_v20 }
 0x1fc   :  { %201 = vrot.lane.b32.xlu1 %v179_v37, %s1188_s21 }
 0x26e   :  { %v202_v38 = vpop.permute.xlu1 %201 }
 0x26f   :  { %1091 = vmatmul.msk.f32.vlgmr.msra.gmra.mxu3 %vm134_vm4, %v202_v38  ;;  %1092 = vmatmul.msk.f32.vlgmr.msrb.gmra.mxu1 %vm134_vm4, %v202_v38 }
 0x270   :  { %487 = vmatpush.msrb.mxu1 %v1242_v0  ;;  %445 = vmatpush.msra.mxu3 %v1305_v28 }
 0x272   :  { %488 = vmatpush.msrb.mxu1 %v1247_v1  ;;  %446 = vmatpush.msra.mxu3 %v1317_v30 }
 0x274   :  { %489 = vmatpush.msrb.mxu1 %v1259_v4  ;;  %447 = vmatpush.msra.mxu3 %v1327_v32 }
 0x276   :  { %490 = vmatpush.msrb.mxu1 %v1266_v5  ;;  %448 = vmatpush.msra.mxu3 %v1343_v35 }
 0x2ec   :  { %v264_v43 = vpop.f32.mrf.mxu1 }
 0x2ed   :  { %v267_v46 = vadd.f32 %v264_v43, %v114_v41 }
 0x2ef   :  { %v268_v49 = vmul.f32 %v267_v46, %v1284_v13 }
 0x2f2   :  { %v222_v44 = vpop.f32.mrf.mxu3 }
 0x2f3   :  { %v223_v45 = vadd.f32 %v222_v44, %v197_v40 }
 0x2f5   :  { %v225_v47 = vadd.f32 %v1376_v42, %v223_v45 }
 0x2f7   :  { %v226_v48 = vmul.f32 %v225_v47, %v1284_v13 }
 0x2f9   :  { %1125 = vtanh.f32 %v226_v48 }
 0x2fa   :  { %1127 = vtanh.f32 %v268_v49 }
 0x2ff   :  { %v1126_v50 = vpop.eup %1125 }
 0x300   :  { %v228_v51 = vmul.f32 %v1126_v50, %v1284_v13  ;;  %v1128_v53 = vpop.eup %1127 }
 0x301   :  { %v270_v54 = vmul.f32 %v1128_v53, %v1284_v13 }
 0x302   :  { %v229_v52 = vadd.f32 %v228_v51, %v1287_v18 }
 0x303   :  { %v271_v55 = vadd.f32 %v270_v54, %v1287_v18 }
 0x304   :  { %232 = vrot.lane.b32.xlu2 %v229_v52, %s1187_s2  ;;  %v230_v60 = vmul.f32 0.0, %v229_v52 }
 0x305   :  { %v272_v63 = vmul.f32 %v271_v55, %v1293_v25 }
 0x30c   :  { %274 = vrot.lane.b32.xlu2 %v271_v55, %s1187_s2 }
 0x35e   :  { %v233_v56 = vpop.permute.xlu2 %232 }
 0x35f   :  { %v235_v57 = vmul.f32 %v233_v56, %v229_v52 }
 0x361   :  { %237 = vrot.lane.b32.xlu0 %v235_v57, %s1188_s21 }
 0x366   :  { %v275_v58 = vpop.permute.xlu2 %274 }
 0x367   :  { %v277_v59 = vmul.f32 %v275_v58, %v271_v55 }
 0x369   :  { %279 = vrot.lane.b32.xlu1 %v277_v59, %s1188_s21 }
 0x3d3   :  { %v238_v61 = vpop.permute.xlu0 %237 }
 0x3d4   :  { %v240_v62 = vadd.f32 %v238_v61, %v230_v60 }
 0x3d6   :  { %1129 = vtanh.f32 %v240_v62 }
 0x3db   :  { %v280_v2 = vpop.permute.xlu1 %279 }
 0x3dc   :  { %v1130_v3 = vpop.eup %1129  ;;  %v282_v6 = vadd.f32 %v280_v2, %v272_v63 }
 0x3dd   :  { %243 = vrot.lane.b32.xlu2 %v1130_v3, %s1187_s2 }
 0x3de   :  { %1131 = vtanh.f32 %v282_v6 }
 0x3e4   :  { %v1132_v7 = vpop.eup %1131 }
 0x3e5   :  { %285 = vrot.lane.b32.xlu0 %v1132_v7, %s1187_s2 }
 0x437   :  { %v244_v8 = vpop.permute.xlu2 %243 }
 0x438   :  { %v246_v10 = vmul.f32 %v244_v8, %v229_v52 }
 0x43a   :  { %290 = vrot.lane.b32.xlu1 %v246_v10, %s1188_s21 }
 0x457   :  { %v286_v11 = vpop.permute.xlu0 %285 }
 0x458   :  { %v288_v12 = vmul.f32 %v286_v11, %v271_v55  ;;  %v58_v55 = vld [vmem:[%s1623_s0 + $0x18] sm:$0xff] }
 0x459   :  { %1086 = vmatmul.msk.f32.gmra.mxu0 %vm68_vm0, %v58_v55 }
 0x45a   :  { %315 = vrot.lane.b32.xlu2 %v288_v12, %s1188_s21 }
 0x4ac   :  { %v291_v15 = vpop.permute.xlu1 %290 }
 0x4ad   :  { %1093 = vmatmul.msk.f32.vlgmr.msrb.gmra.mxu2 %vm134_vm4, %v291_v15 }
 0x4ae   :  { %534 = vmatpush.msrb.mxu2 %v1300_v27 }
 0x4b0   :  { %535 = vmatpush.msrb.mxu2 %v1310_v29 }
 0x4b2   :  { %536 = vmatpush.msrb.mxu2 %v1322_v31 }
 0x4b4   :  { %v316_v16 = vpop.permute.xlu2 %315  ;;  %537 = vmatpush.msrb.mxu2 %v1338_v34 }
 0x4b5   :  { %1094 = vmatmul.msk.f32.vlgmr.msrb.gmra.mxu3 %vm134_vm4, %v316_v16  ;;  %1095 = vmatmul.msk.f32.vlgmr.msra.gmra.mxu1 %vm134_vm4, %v316_v16 }
 0x4b6   :  { %559 = vmatpush.msrb.mxu3 %v1305_v28  ;;  %601 = vmatpush.msra.mxu1 %v1242_v0 }
 0x4b8   :  { %560 = vmatpush.msrb.mxu3 %v1317_v30  ;;  %602 = vmatpush.msra.mxu1 %v1247_v1 }
 0x4ba   :  { %561 = vmatpush.msrb.mxu3 %v1327_v32  ;;  %603 = vmatpush.msra.mxu1 %v1259_v4 }
 0x4bc   :  { %562 = vmatpush.msrb.mxu3 %v1343_v35  ;;  %604 = vmatpush.msra.mxu1 %v1266_v5 }
 0x530   :  { %v311_v23 = vpop.f32.mrf.mxu2 }
 0x532   :  { %v378_v20 = vpop.f32.mrf.mxu1 }
 0x533   :  { %v381_v21 = vadd.f32 %v378_v20, %v117_v19 }
 0x535   :  { %v382_v22 = vmul.f32 %v381_v21, %v1284_v13 }
 0x537   :  { %1133 = vtanh.f32 %v382_v22 }
 0x538   :  { %v336_v24 = vpop.f32.mrf.mxu3 }
 0x539   :  { %v337_v25 = vadd.f32 %v336_v24, %v311_v23 }
 0x53b   :  { %v339_v26 = vadd.f32 %v1376_v42, %v337_v25 }
 0x53d   :  { %v1134_v33 = vpop.eup %1133  ;;  %v340_v36 = vmul.f32 %v339_v26, %v1284_v13 }
 0x53e   :  { %v384_v37 = vmul.f32 %v1134_v33, %v1284_v13 }
 0x53f   :  { %1135 = vtanh.f32 %v340_v36 }
 0x540   :  { %v385_v38 = vadd.f32 %v384_v37, %v1287_v18 }
 0x542   :  { %388 = vrot.lane.b32.xlu1 %v385_v38, %s1187_s2  ;;  %v386_v51 = vmul.f32 %v385_v38, %v282_v6 }
 0x545   :  { %v1136_v39 = vpop.eup %1135 }
 0x546   :  { %v342_v40 = vmul.f32 %v1136_v39, %v1284_v13 }
 0x548   :  { %v343_v41 = vadd.f32 %v342_v40, %v1287_v18 }
 0x54a   :  { %346 = vrot.lane.b32.xlu0 %v343_v41, %s1187_s2  ;;  %v344_v47 = vmul.f32 %v343_v41, %v240_v62  ;;  %v119_v62 = vpop.f32.mrf.mxu0 }
 0x54b   :  { %v120_v63 = vadd.f32 %v1281_v9, %v119_v62 }
 0x5b4   :  { %v389_v43 = vpop.permute.xlu1 %388 }
 0x5b5   :  { %v391_v44 = vmul.f32 %v389_v43, %v385_v38 }
 0x5b7   :  { %393 = vrot.lane.b32.xlu0 %v391_v44, %s1188_s21 }
 0x5bc   :  { %v347_v45 = vpop.permute.xlu0 %346 }
 0x5bd   :  { %v349_v46 = vmul.f32 %v347_v45, %v343_v41 }
 0x5bf   :  { %351 = vrot.lane.b32.xlu2 %v349_v46, %s1188_s21  ;;  %v59_v46 = vld [vmem:[%s1623_s0 + $0x20] sm:$0xff] }
 0x5c0   :  { %1087 = vmatmul.msk.f32.gmra.mxu0 %vm68_vm0, %v59_v46 }
 0x619   :  { %v352_v48 = vpop.permute.xlu2 %351 }
 0x61a   :  { %v1425_v49 = vadd.f32 %v352_v48, %v344_v47 }
 0x61c   :  { %1137 = vtanh.f32 %v1425_v49 }
 0x622   :  { %v1138_v50 = vpop.eup %1137 }
 0x623   :  { %357 = vrot.lane.b32.xlu1 %v1138_v50, %s1187_s2 }
 0x629   :  { %v394_v52 = vpop.permute.xlu0 %393 }
 0x62a   :  { %v396_v53 = vadd.f32 %v394_v52, %v386_v51 }
 0x62c   :  { %1139 = vtanh.f32 %v396_v53 }
 0x632   :  { %v1140_v54 = vpop.eup %1139 }
 0x633   :  { %399 = vrot.lane.b32.xlu2 %v1140_v54, %s1187_s2 }
 0x68d   :  { %v400_v56 = vpop.permute.xlu2 %399 }
 0x68e   :  { %v402_v57 = vmul.f32 %v400_v56, %v385_v38 }
 0x690   :  { %429 = vrot.lane.b32.xlu1 %v402_v57, %s1188_s21 }
 0x695   :  { %v358_v58 = vpop.permute.xlu1 %357 }
 0x696   :  { %v360_v59 = vmul.f32 %v358_v58, %v343_v41 }
 0x698   :  { %404 = vrot.lane.b32.xlu0 %v360_v59, %s1188_s21 }
 0x702   :  { %v430_v60 = vpop.permute.xlu1 %429 }
 0x703   :  { %1097 = vmatmul.msk.f32.vlgmr.msra.gmra.mxu3 %vm134_vm4, %v430_v60  ;;  %1098 = vmatmul.msk.f32.vlgmr.msrb.gmra.mxu1 %vm134_vm4, %v430_v60 }
 0x704   :  { %673 = vmatpush.msra.mxu3 %v1305_v28  ;;  %715 = vmatpush.msrb.mxu1 %v1242_v0 }
 0x706   :  { %674 = vmatpush.msra.mxu3 %v1317_v30  ;;  %716 = vmatpush.msrb.mxu1 %v1247_v1 }
 0x708   :  { %675 = vmatpush.msra.mxu3 %v1327_v32  ;;  %717 = vmatpush.msrb.mxu1 %v1259_v4 }
 0x70a   :  { %v405_v61 = vpop.permute.xlu0 %404  ;;  %676 = vmatpush.msra.mxu3 %v1343_v35  ;;  %718 = vmatpush.msrb.mxu1 %v1266_v5 }
 0x70b   :  { %1096 = vmatmul.msk.f32.vlgmr.msra.gmra.mxu2 %vm134_vm4, %v405_v61 }
 0x70c   :  { %648 = vmatpush.msra.mxu2 %v1300_v27 }
 0x70e   :  { %649 = vmatpush.msra.mxu2 %v1310_v29 }
 0x710   :  { %650 = vmatpush.msra.mxu2 %v1322_v31 }
 0x712   :  { %651 = vmatpush.msra.mxu2 %v1338_v34 }
 0x780   :  { %v492_v2 = vpop.f32.mrf.mxu1 }
 0x781   :  { %v495_v3 = vadd.f32 %v492_v2, %v120_v63 }
 0x783   :  { %v496_v6 = vmul.f32 %v495_v3, %v1284_v13 }
 0x785   :  { %1141 = vtanh.f32 %v496_v6 }
 0x786   :  { %v450_v10 = vpop.f32.mrf.mxu3 }
 0x78b   :  { %v1142_v7 = vpop.eup %1141 }
 0x78c   :  { %v498_v8 = vmul.f32 %v1142_v7, %v1284_v13 }
 0x78e   :  { %v425_v11 = vpop.f32.mrf.mxu2  ;;  %v499_v12 = vadd.f32 %v498_v8, %v1287_v18 }
 0x78f   :  { %v451_v14 = vadd.f32 %v450_v10, %v425_v11 }
 0x790   :  { %502 = vrot.lane.b32.xlu0 %v499_v12, %s1187_s2  ;;  %v500_v25 = vmul.f32 %v499_v12, %v396_v53 }
 0x791   :  { %v453_v15 = vadd.f32 %v1376_v42, %v451_v14 }
 0x793   :  { %v454_v16 = vmul.f32 %v453_v15, %v1284_v13 }
 0x795   :  { %1143 = vtanh.f32 %v454_v16 }
 0x79b   :  { %v1144_v17 = vpop.eup %1143 }
 0x79c   :  { %v456_v19 = vmul.f32 %v1144_v17, %v1284_v13 }
 0x79e   :  { %v457_v20 = vadd.f32 %v456_v19, %v1287_v18 }
 0x7a0   :  { %460 = vrot.lane.b32.xlu2 %v457_v20, %s1187_s2  ;;  %v458_v37 = vmul.f32 %v457_v20, %v1425_v49  ;;  %v122_v49 = vpop.f32.mrf.mxu0 }
 0x7a1   :  { %v123_v50 = vadd.f32 %v1281_v9, %v122_v49 }
 0x7fa   :  { %v461_v21 = vpop.permute.xlu2 %460 }
 0x7fb   :  { %v463_v22 = vmul.f32 %v461_v21, %v457_v20 }
 0x7fd   :  { %465 = vrot.lane.b32.xlu1 %v463_v22, %s1188_s21 }
 0x802   :  { %v503_v23 = vpop.permute.xlu0 %502 }
 0x803   :  { %v505_v24 = vmul.f32 %v503_v23, %v499_v12 }
 0x805   :  { %507 = vrot.lane.b32.xlu2 %v505_v24, %s1188_s21 }
 0x85f   :  { %v508_v26 = vpop.permute.xlu2 %507 }
 0x860   :  { %v510_v33 = vadd.f32 %v508_v26, %v500_v25 }
 0x862   :  { %1145 = vtanh.f32 %v510_v33 }
 0x868   :  { %v1146_v36 = vpop.eup %1145 }
 0x869   :  { %513 = vrot.lane.b32.xlu1 %v1146_v36, %s1187_s2 }
 0x86f   :  { %v466_v38 = vpop.permute.xlu1 %465 }
 0x870   :  { %v468_v39 = vadd.f32 %v466_v38, %v458_v37 }
 0x872   :  { %1147 = vtanh.f32 %v468_v39 }
 0x878   :  { %v1148_v40 = vpop.eup %1147 }
 0x879   :  { %471 = vrot.lane.b32.xlu0 %v1148_v40, %s1187_s2 }
 0x8db   :  { %v514_v41 = vpop.permute.xlu1 %513 }
 0x8dc   :  { %v516_v43 = vmul.f32 %v514_v41, %v499_v12 }
 0x8de   :  { %543 = vrot.lane.b32.xlu0 %v516_v43, %s1188_s21 }
 0x8eb   :  { %v472_v44 = vpop.permute.xlu0 %471 }
 0x8ec   :  { %v474_v45 = vmul.f32 %v472_v44, %v457_v20  ;;  %v60_v20 = vld [vmem:[%s1623_s0 + $0x28] sm:$0xff] }
 0x8ed   :  { %1088 = vmatmul.msk.f32.gmra.mxu0 %vm68_vm0, %v60_v20 }
 0x8ee   :  { %518 = vrot.lane.b32.xlu2 %v474_v45, %s1188_s21 }
 0x948   :  { %v519_v47 = vpop.permute.xlu2 %518 }
 0x949   :  { %1099 = vmatmul.msk.f32.vlgmr.msrb.gmra.mxu2 %vm134_vm4, %v519_v47 }
 0x94a   :  { %762 = vmatpush.msrb.mxu2 %v1300_v27 }
 0x94c   :  { %763 = vmatpush.msrb.mxu2 %v1310_v29 }
 0x94e   :  { %764 = vmatpush.msrb.mxu2 %v1322_v31 }
 0x950   :  { %v544_v48 = vpop.permute.xlu0 %543  ;;  %765 = vmatpush.msrb.mxu2 %v1338_v34 }
 0x951   :  { %1100 = vmatmul.msk.f32.vlgmr.msrb.gmra.mxu3 %vm134_vm4, %v544_v48  ;;  %1101 = vmatmul.msk.f32.vlgmr.msra.gmra.mxu1 %vm134_vm4, %v544_v48 }
 0x952   :  { %787 = vmatpush.msrb.mxu3 %v1305_v28  ;;  %829 = vmatpush.msra.mxu1 %v1242_v0 }
 0x954   :  { %788 = vmatpush.msrb.mxu3 %v1317_v30  ;;  %830 = vmatpush.msra.mxu1 %v1247_v1 }
 0x956   :  { %789 = vmatpush.msrb.mxu3 %v1327_v32  ;;  %831 = vmatpush.msra.mxu1 %v1259_v4 }
 0x958   :  { %790 = vmatpush.msrb.mxu3 %v1343_v35  ;;  %832 = vmatpush.msra.mxu1 %v1266_v5 }
 0x9cc   :  { %v539_v54 = vpop.f32.mrf.mxu2 }
 0x9ce   :  { %v606_v51 = vpop.f32.mrf.mxu1 }
 0x9cf   :  { %v609_v52 = vadd.f32 %v606_v51, %v123_v50 }
 0x9d1   :  { %v610_v53 = vmul.f32 %v609_v52, %v1284_v13 }
 0x9d3   :  { %1149 = vtanh.f32 %v610_v53 }
 0x9d4   :  { %v564_v55 = vpop.f32.mrf.mxu3 }
 0x9d5   :  { %v565_v56 = vadd.f32 %v564_v55, %v539_v54 }
 0x9d7   :  { %v567_v57 = vadd.f32 %v1376_v42, %v565_v56 }
 0x9d9   :  { %v1150_v58 = vpop.eup %1149  ;;  %v568_v59 = vmul.f32 %v567_v57, %v1284_v13 }
 0x9da   :  { %v612_v60 = vmul.f32 %v1150_v58, %v1284_v13 }
 0x9db   :  { %1151 = vtanh.f32 %v568_v59 }
 0x9dc   :  { %v613_v61 = vadd.f32 %v612_v60, %v1287_v18 }
 0x9de   :  { %616 = vrot.lane.b32.xlu2 %v613_v61, %s1187_s2  ;;  %v614_v10 = vmul.f32 %v613_v61, %v510_v33 }
 0x9e1   :  { %v1152_v62 = vpop.eup %1151 }
 0x9e2   :  { %v570_v63 = vmul.f32 %v1152_v62, %v1284_v13  ;;  %v61_v62 = vld [vmem:[%s1623_s0 + $0x30] sm:$0xff] }
 0x9e3   :  { %1089 = vmatmul.msk.f32.gmra.mxu0 %vm68_vm0, %v61_v62 }
 0x9e4   :  { %v571_v2 = vadd.f32 %v570_v63, %v1287_v18 }
 0x9e6   :  { %574 = vrot.lane.b32.xlu1 %v571_v2, %s1187_s2  ;;  %v572_v15 = vmul.f32 %v571_v2, %v468_v39 }
 0xa38   :  { %v617_v3 = vpop.permute.xlu2 %616 }
 0xa39   :  { %v619_v6 = vmul.f32 %v617_v3, %v613_v61 }
 0xa3b   :  { %621 = vrot.lane.b32.xlu1 %v619_v6, %s1188_s21 }
 0xa58   :  { %v575_v7 = vpop.permute.xlu1 %574 }
 0xa59   :  { %v577_v8 = vmul.f32 %v575_v7, %v571_v2 }
 0xa5b   :  { %579 = vrot.lane.b32.xlu0 %v577_v8, %s1188_s21 }
 0xaad   :  { %v622_v11 = vpop.permute.xlu1 %621 }
 0xaae   :  { %v624_v12 = vadd.f32 %v622_v11, %v614_v10 }
 0xab0   :  { %1153 = vtanh.f32 %v624_v12 }
 0xab6   :  { %v1154_v14 = vpop.eup %1153 }
 0xab7   :  { %627 = vrot.lane.b32.xlu0 %v1154_v14, %s1187_s2 }
 0xacd   :  { %v580_v16 = vpop.permute.xlu0 %579 }
 0xace   :  { %v582_v17 = vadd.f32 %v580_v16, %v572_v15 }
 0xad0   :  { %1155 = vtanh.f32 %v582_v17 }
 0xad6   :  { %v1156_v19 = vpop.eup %1155 }
 0xad7   :  { %585 = vrot.lane.b32.xlu2 %v1156_v19, %s1187_s2 }
 0xb29   :  { %v628_v21 = vpop.permute.xlu0 %627 }
 0xb2a   :  { %v630_v22 = vmul.f32 %v628_v21, %v613_v61 }
 0xb2c   :  { %657 = vrot.lane.b32.xlu2 %v630_v22, %s1188_s21 }
 0xb31   :  { %v586_v23 = vpop.permute.xlu2 %585 }
 0xb32   :  { %v588_v24 = vmul.f32 %v586_v23, %v571_v2 }
 0xb34   :  { %632 = vrot.lane.b32.xlu1 %v588_v24, %s1188_s21 }
 0xb86   :  { %v658_v25 = vpop.permute.xlu2 %657 }
 0xb87   :  { %1103 = vmatmul.msk.f32.vlgmr.msra.gmra.mxu3 %vm134_vm4, %v658_v25  ;;  %1104 = vmatmul.msk.f32.vlgmr.msrb.gmra.mxu1 %vm134_vm4, %v658_v25 }
 0xb88   :  { %901 = vmatpush.msra.mxu3 %v1305_v28  ;;  %943 = vmatpush.msrb.mxu1 %v1242_v0  ;;  %v125_v0 = vpop.f32.mrf.mxu0 }
 0xb8a   :  { %902 = vmatpush.msra.mxu3 %v1317_v30  ;;  %944 = vmatpush.msrb.mxu1 %v1247_v1  ;;  %v126_v1 = vadd.f32 %v1281_v9, %v125_v0 }
 0xb8c   :  { %903 = vmatpush.msra.mxu3 %v1327_v32  ;;  %945 = vmatpush.msrb.mxu1 %v1259_v4 }
 0xb8e   :  { %904 = vmatpush.msra.mxu3 %v1343_v35  ;;  %946 = vmatpush.msrb.mxu1 %v1266_v5 }
 0xb90   :  { %v128_v7 = vpop.f32.mrf.mxu0 }
 0xba6   :  { %v633_v26 = vpop.permute.xlu1 %632 }
 0xba7   :  { %1102 = vmatmul.msk.f32.vlgmr.msra.gmra.mxu2 %vm134_vm4, %v633_v26 }
 0xba8   :  { %876 = vmatpush.msra.mxu2 %v1300_v27 }
 0xbaa   :  { %877 = vmatpush.msra.mxu2 %v1310_v29 }
 0xbac   :  { %878 = vmatpush.msra.mxu2 %v1322_v31 }
 0xbae   :  { %879 = vmatpush.msra.mxu2 %v1338_v34 }
 0xc04   :  { %v720_v33 = vpop.f32.mrf.mxu1 }
 0xc05   :  { %v723_v4 = vadd.f32 %v720_v33, %v126_v1 }
 0xc07   :  { %v724_v36 = vmul.f32 %v723_v4, %v1284_v13 }
 0xc09   :  { %1157 = vtanh.f32 %v724_v36 }
 0xc0a   :  { %v678_v39 = vpop.f32.mrf.mxu3 }
 0xc0f   :  { %v1158_v5 = vpop.eup %1157 }
 0xc10   :  { %v726_v37 = vmul.f32 %v1158_v5, %v1284_v13  ;;  %v62_v5 = vld [vmem:[%s1623_s0 + $0x38] sm:$0xff] }
 0xc11   :  { %1090 = vmatmul.msk.f32.gmra.mxu0 %vm68_vm0, %v62_v5 }
 0xc12   :  { %v727_v38 = vadd.f32 %v726_v37, %v1287_v18 }
 0xc14   :  { %730 = vrot.lane.b32.xlu1 %v727_v38, %s1187_s2  ;;  %v728_v52 = vmul.f32 %v727_v38, %v624_v12 }
 0xc2a   :  { %v653_v40 = vpop.f32.mrf.mxu2 }
 0xc2b   :  { %v679_v41 = vadd.f32 %v678_v39, %v653_v40 }
 0xc2d   :  { %v681_v43 = vadd.f32 %v1376_v42, %v679_v41 }
 0xc2f   :  { %v682_v44 = vmul.f32 %v681_v43, %v1284_v13 }
 0xc31   :  { %1159 = vtanh.f32 %v682_v44 }
 0xc37   :  { %v1160_v45 = vpop.eup %1159 }
 0xc38   :  { %v684_v46 = vmul.f32 %v1160_v45, %v1284_v13 }
 0xc3a   :  { %v685_v47 = vadd.f32 %v684_v46, %v1287_v18 }
 0xc3c   :  { %688 = vrot.lane.b32.xlu0 %v685_v47, %s1187_s2  ;;  %v686_v56 = vmul.f32 %v685_v47, %v582_v17 }
 0xc86   :  { %v731_v48 = vpop.permute.xlu1 %730 }
 0xc87   :  { %v733_v49 = vmul.f32 %v731_v48, %v727_v38 }
 0xc89   :  { %735 = vrot.lane.b32.xlu0 %v733_v49, %s1188_s21 }
 0xc8e   :  { %v131_v41 = vpop.f32.mrf.mxu0 }
 0xc8f   :  { %v132_v43 = vadd.f32 %v1281_v9, %v131_v41 }
 0xcae   :  { %v689_v50 = vpop.permute.xlu0 %688 }
 0xcaf   :  { %v691_v51 = vmul.f32 %v689_v50, %v685_v47 }
 0xcb1   :  { %693 = vrot.lane.b32.xlu2 %v691_v51, %s1188_s21 }
 0xcfb   :  { %v736_v53 = vpop.permute.xlu0 %735 }
 0xcfc   :  { %v738_v54 = vadd.f32 %v736_v53, %v728_v52 }
 0xcfe   :  { %1161 = vtanh.f32 %v738_v54 }
 0xd04   :  { %v1162_v55 = vpop.eup %1161 }
 0xd05   :  { %741 = vrot.lane.b32.xlu2 %v1162_v55, %s1187_s2 }
 0xd0b   :  { %v694_v57 = vpop.permute.xlu2 %693 }
 0xd0c   :  { %v696_v58 = vadd.f32 %v694_v57, %v686_v56 }
 0xd0e   :  { %1163 = vtanh.f32 %v696_v58 }
 0xd14   :  { %v1164_v59 = vpop.eup %1163 }
 0xd15   :  { %699 = vrot.lane.b32.xlu1 %v1164_v59, %s1187_s2 }
 0xd5f   :  { %v742_v60 = vpop.permute.xlu2 %741 }
 0xd60   :  { %v744_v61 = vmul.f32 %v742_v60, %v727_v38 }
 0xd62   :  { %771 = vrot.lane.b32.xlu1 %v744_v61, %s1188_s21 }
 0xd87   :  { %v700_v63 = vpop.permute.xlu1 %699 }
 0xd88   :  { %v702_v2 = vmul.f32 %v700_v63, %v685_v47 }
 0xd8a   :  { %746 = vrot.lane.b32.xlu0 %v702_v2, %s1188_s21 }
 0xdd4   :  { %v772_v3 = vpop.permute.xlu1 %771 }
 0xdd5   :  { %1106 = vmatmul.msk.f32.vlgmr.msrb.gmra.mxu3 %vm134_vm4, %v772_v3  ;;  %1107 = vmatmul.msk.f32.vlgmr.msra.gmra.mxu1 %vm134_vm4, %v772_v3 }
 0xdd6   :  { %1015 = vmatpush.msrb.mxu3 %v1305_v28  ;;  %v129_v28 = vadd.f32 %v1281_v9, %v128_v7 }
 0xdd8   :  { %1016 = vmatpush.msrb.mxu3 %v1317_v30 }
 0xdda   :  { %1017 = vmatpush.msrb.mxu3 %v1327_v32 }
 0xddc   :  { %1018 = vmatpush.msrb.mxu3 %v1343_v35 }
 0xdfc   :  { %v747_v6 = vpop.permute.xlu0 %746 }
 0xdfd   :  { %1105 = vmatmul.msk.f32.vlgmr.msrb.gmra.mxu2 %vm134_vm4, %v747_v6 }
 0xdfe   :  { %990 = vmatpush.msrb.mxu2 %v1300_v27 }
 0xe00   :  { %991 = vmatpush.msrb.mxu2 %v1310_v29 }
 0xe02   :  { %992 = vmatpush.msrb.mxu2 %v1322_v31 }
 0xe04   :  { %993 = vmatpush.msrb.mxu2 %v1338_v34 }
 0xe52   :  { %v834_v8 = vpop.f32.mrf.mxu1 }
 0xe53   :  { %v837_v30 = vadd.f32 %v834_v8, %v129_v28 }
 0xe55   :  { %v838_v32 = vmul.f32 %v837_v30, %v1284_v13 }
 0xe57   :  { %1165 = vtanh.f32 %v838_v32 }
 0xe58   :  { %v792_v27 = vpop.f32.mrf.mxu3 }
 0xe5d   :  { %v1166_v35 = vpop.eup %1165 }
 0xe5e   :  { %v840_v10 = vmul.f32 %v1166_v35, %v1284_v13 }
 0xe60   :  { %v841_v11 = vadd.f32 %v840_v10, %v1287_v18 }
 0xe62   :  { %844 = vrot.lane.b32.xlu0 %v841_v11, %s1187_s2  ;;  %v842_v22 = vmul.f32 %v841_v11, %v738_v54 }
 0xe80   :  { %v767_v29 = vpop.f32.mrf.mxu2 }
 0xe81   :  { %v793_v31 = vadd.f32 %v792_v27, %v767_v29 }
 0xe83   :  { %v795_v34 = vadd.f32 %v1376_v42, %v793_v31 }
 0xe85   :  { %v796_v12 = vmul.f32 %v795_v34, %v1284_v13 }
 0xe87   :  { %1167 = vtanh.f32 %v796_v12 }
 0xe8d   :  { %v1168_v14 = vpop.eup %1167 }
 0xe8e   :  { %v798_v15 = vmul.f32 %v1168_v14, %v1284_v13 }
 0xe90   :  { %v799_v16 = vadd.f32 %v798_v15, %v1287_v18 }
 0xe92   :  { %802 = vrot.lane.b32.xlu2 %v799_v16, %s1187_s2  ;;  %v800_v26 = vmul.f32 %v799_v16, %v696_v58 }
 0xed4   :  { %v845_v17 = vpop.permute.xlu0 %844 }
 0xed5   :  { %v847_v19 = vmul.f32 %v845_v17, %v841_v11 }
 0xed7   :  { %849 = vrot.lane.b32.xlu2 %v847_v19, %s1188_s21 }
 0xeec   :  { %v803_v20 = vpop.permute.xlu2 %802 }
 0xeed   :  { %v805_v21 = vmul.f32 %v803_v20, %v799_v16 }
 0xeef   :  { %807 = vrot.lane.b32.xlu1 %v805_v21, %s1188_s21 }
 0xf31   :  { %v850_v23 = vpop.permute.xlu2 %849 }
 0xf32   :  { %v852_v24 = vadd.f32 %v850_v23, %v842_v22 }
 0xf34   :  { %1169 = vtanh.f32 %v852_v24 }
 0xf3a   :  { %v1170_v25 = vpop.eup %1169 }
 0xf3b   :  { %855 = vrot.lane.b32.xlu1 %v1170_v25, %s1187_s2 }
 0xf61   :  { %v808_v0 = vpop.permute.xlu1 %807 }
 0xf62   :  { %v810_v1 = vadd.f32 %v808_v0, %v800_v26 }
 0xf64   :  { %1171 = vtanh.f32 %v810_v1 }
 0xf6a   :  { %v1172_v33 = vpop.eup %1171 }
 0xf6b   :  { %813 = vrot.lane.b32.xlu0 %v1172_v33, %s1187_s2 }
 0xfad   :  { %v856_v4 = vpop.permute.xlu1 %855 }
 0xfae   :  { %v858_v36 = vmul.f32 %v856_v4, %v841_v11 }
 0xfb0   :  { %885 = vrot.lane.b32.xlu0 %v858_v36, %s1188_s21 }
 0xfdd   :  { %v814_v37 = vpop.permute.xlu0 %813 }
 0xfde   :  { %v816_v38 = vmul.f32 %v814_v37, %v799_v16 }
 0xfe0   :  { %860 = vrot.lane.b32.xlu2 %v816_v38, %s1188_s21 }
0x1022   :  { %v886_v39 = vpop.permute.xlu0 %885 }
0x1023   :  { %1109 = vmatmul.msk.f32.vlgmr.msra.gmra.mxu3 %vm134_vm4, %v886_v39  ;;  %1110 = vmatmul.msk.f32.vlgmr.msrb.gmra.mxu1 %vm134_vm4, %v886_v39 }
0x103a   :  { %v861_v40 = vpop.permute.xlu2 %860 }
0x103b   :  { %1108 = vmatmul.msk.f32.vlgmr.msra.gmra.mxu2 %vm134_vm4, %v861_v40 }
0x10a0   :  { %v948_v44 = vpop.f32.mrf.mxu1 }
0x10a1   :  { %v951_v45 = vadd.f32 %v948_v44, %v132_v43 }
0x10a3   :  { %v952_v46 = vmul.f32 %v951_v45, %v1284_v13 }
0x10a5   :  { %1173 = vtanh.f32 %v952_v46 }
0x10a6   :  { %v906_v50 = vpop.f32.mrf.mxu3 }
0x10ab   :  { %v1174_v47 = vpop.eup %1173 }
0x10ac   :  { %v954_v48 = vmul.f32 %v1174_v47, %v1284_v13 }
0x10ae   :  { %v955_v49 = vadd.f32 %v954_v48, %v1287_v18 }
0x10b0   :  { %958 = vrot.lane.b32.xlu2 %v955_v49, %s1187_s2  ;;  %v956_v61 = vmul.f32 %v955_v49, %v852_v24  ;;  %v1045_v24 = vld [vmem:[%s1628_s7] sm:$0xff] }
0x10be   :  { %v881_v51 = vpop.f32.mrf.mxu2 }
0x10bf   :  { %v907_v52 = vadd.f32 %v906_v50, %v881_v51 }
0x10c1   :  { %v909_v53 = vadd.f32 %v1376_v42, %v907_v52 }
0x10c3   :  { %v910_v54 = vmul.f32 %v909_v53, %v1284_v13 }
0x10c5   :  { %1175 = vtanh.f32 %v910_v54 }
0x10cb   :  { %v1176_v9 = vpop.eup %1175 }
0x10cc   :  { %v912_v55 = vmul.f32 %v1176_v9, %v1284_v13 }
0x10ce   :  { %v913_v56 = vadd.f32 %v912_v55, %v1287_v18 }
0x10d0   :  { %916 = vrot.lane.b32.xlu1 %v913_v56, %s1187_s2  ;;  %v914_v3 = vmul.f32 %v913_v56, %v810_v1  ;;  %v1120_v1 = vld [vmem:[%s1629_s8] ss:$0 sm:$0xff] }
0x110a   :  { %v959_v57 = vpop.permute.xlu2 %958 }
0x110b   :  { %v961_v58 = vmul.f32 %v959_v57, %v955_v49 }
0x110d   :  { %963 = vrot.lane.b32.xlu1 %v961_v58, %s1188_s21 }
0x1142   :  { %v917_v59 = vpop.permute.xlu1 %916 }
0x1143   :  { %v919_v60 = vmul.f32 %v917_v59, %v913_v56 }
0x1145   :  { %921 = vrot.lane.b32.xlu0 %v919_v60, %s1188_s21 }
0x117f   :  { %v964_v62 = vpop.permute.xlu1 %963 }
0x1180   :  { %v966_v63 = vadd.f32 %v964_v62, %v956_v61 }
0x1182   :  { %1177 = vtanh.f32 %v966_v63 }
0x1188   :  { %v1178_v2 = vpop.eup %1177 }
0x1189   :  { %969 = vrot.lane.b32.xlu0 %v1178_v2, %s1187_s2 }
0x11b7   :  { %v922_v6 = vpop.permute.xlu0 %921 }
0x11b8   :  { %v924_v7 = vadd.f32 %v922_v6, %v914_v3 }
0x11ba   :  { %1179 = vtanh.f32 %v924_v7 }
0x11c0   :  { %v1180_v28 = vpop.eup %1179 }
0x11c1   :  { %927 = vrot.lane.b32.xlu2 %v1180_v28, %s1187_s2 }
0x11fb   :  { %v970_v8 = vpop.permute.xlu0 %969 }
0x11fc   :  { %v972_v30 = vmul.f32 %v970_v8, %v955_v49 }
0x11fe   :  { %999 = vrot.lane.b32.xlu2 %v972_v30, %s1188_s21 }
0x121b   :  { %v928_v32 = vpop.permute.xlu2 %927 }
0x121c   :  { %v930_v35 = vmul.f32 %v928_v32, %v913_v56 }
0x121e   :  { %974 = vrot.lane.b32.xlu1 %v930_v35, %s1188_s21 }
0x1258   :  { %v1000_v10 = vpop.permute.xlu2 %999 }
0x1259   :  { %1112 = vmatmul.msk.f32.vlgmr.msrb.gmra.mxu3 %vm134_vm4, %v1000_v10 }
0x1290   :  { %v975_v11 = vpop.permute.xlu1 %974 }
0x1291   :  { %1111 = vmatmul.msk.f32.vlgmr.msrb.gmra.mxu2 %vm134_vm4, %v975_v11 }
0x12dc   :  { %v1020_v27 = vpop.f32.mrf.mxu3 }
0x1314   :  { %v995_v29 = vpop.f32.mrf.mxu2 }
0x1315   :  { %v1021_v31 = vadd.f32 %v1020_v27, %v995_v29 }
0x1317   :  { %v1023_v34 = vadd.f32 %v1376_v42, %v1021_v31  ;;  %v1048_v42 = vld [vmem:[%s1628_s7 + $0x18] sm:$0xff] }
0x1318   :  { %1070 = vmatpush.msrb.mxu0 %v1048_v42 }
0x1319   :  { %v1024_v12 = vmul.f32 %v1023_v34, %v1284_v13 }
0x131b   :  { %1181 = vtanh.f32 %v1024_v12 }
0x1321   :  { %v1182_v14 = vpop.eup %1181 }
0x1322   :  { %v1026_v15 = vmul.f32 %v1182_v14, %v1284_v13  ;;  %v1047_v13 = vld [vmem:[%s1628_s7 + $0x10] sm:$0xff] }
0x1323   :  { %1071 = vmatpush.msrb.mxu0 %v1047_v13 }
0x1324   :  { %v1027_v16 = vadd.f32 %v1026_v15, %v1287_v18  ;;  %v1046_v18 = vld [vmem:[%s1628_s7 + $0x8] sm:$0xff] }
0x1325   :  { %1072 = vmatpush.msrb.mxu0 %v1046_v18 }
0x1326   :  { %1030 = vrot.lane.b32.xlu0 %v1027_v16, %s1187_s2  ;;  %v1028_v20 = vmul.f32 %v1027_v16, %v924_v7 }
0x1327   :  { %1073 = vmatpush.msrb.mxu0 %v1045_v24 }
0x1398   :  { %v1031_v17 = vpop.permute.xlu0 %1030 }
0x1399   :  { %v1033_v19 = vmul.f32 %v1031_v17, %v1027_v16 }
0x139b   :  { %1035 = vrot.lane.b32.xlu1 %v1033_v19, %s1188_s21 }
0x140d   :  { %v1036_v21 = vpop.permute.xlu1 %1035 }
0x140e   :  { %v1038_v22 = vadd.f32 %v1036_v21, %v1028_v20 }
0x1410   :  { %1183 = vtanh.f32 %v1038_v22 }
0x1416   :  { %v1184_v23 = vpop.eup %1183 }
0x1417   :  { %1041 = vrot.lane.b32.xlu2 %v1184_v23, %s1187_s2 }
0x1471   :  { %v1042_v25 = vpop.permute.xlu2 %1041 }
0x1472   :  { %v1044_v26 = vmul.f32 %v1042_v25, %v1027_v16 }
0x1474   :  { %1054 = vrot.lane.b32.xlu0 %v1044_v26, %s1188_s21 }
0x14e6   :  { %v1055_v0 = vpop.permute.xlu0 %1054 }
0x14e7   :  { %1113 = vmatmul.msk.f32.vlgmr.msrb.gmra.mxu0 %vm134_vm4, %v1055_v0 }
0x1564   :  { %v1075_v33 = vpop.f32.mrf.mxu0 }
0x1565   :  { %v1076_v4 = vadd.f32 %v1120_v1, %v1075_v33 }
0x1567   :  { %1078 = vst [vmem:[%s1630_s9] sm:$0xff] %v1076_v4 }

</bundles_post_ra>
